<compile_context>
chip_gen: v6e
topology: v6e:2x2x1
jax: 0.10.0
libtpu: 0.0.40
codegen_flags: <defaults>
</compile_context>

<pallas_src>
import math
import functools

import jax
import jax.numpy as jnp
from jax import lax
from jax.experimental import pallas as pl
from jax.experimental.pallas import tpu as pltpu


# ----------------------------------------------------------------------------- helpers
def _round_up(x, m):
    return ((x + m - 1) // m) * m


def _largest_divisor(total, limit):
    """Largest d | total with d <= limit and (d % 8 == 0 or d == total)."""
    best = None
    for d in range(1, total + 1):
        if total % d == 0 and d <= limit and (d % 8 == 0 or d == total):
            best = d
    return best if best is not None else total


def _vmem_capacity_bytes():
    try:
        return int(pltpu.get_tpu_info().vmem_capacity_bytes)
    except Exception:
        return 64 * 1024 * 1024  # conservative (v7x-sized) default


# ----------------------------------------------------------------------------- kernel
def _upsample_kernel(x_ref, w_ref, b_ref, o_ref, *, r, tg, th, W, C):
    # x_ref: (C, th, W)        input activations for th image rows
    # w_ref: (tg*r*r, C)       conv weights, rows ordered (ri, rj, g_local)
    # b_ref: (tg*r*r, 1)       conv bias, same ordering
    # o_ref: (tg, th*r*r*W)    pixel-shuffled rows, flattened (h, ri, w, rj)
    f32 = jnp.float32
    Wr = W * r
    chunk = r * r * W  # lanes written per image row h

    # 0/1 interleave matrices: P[rj][w, w*r + rj] = 1.  The pixel-shuffle along
    # lanes becomes a matmul (runs on the otherwise idle MXU).
    col = lax.broadcasted_iota(jnp.int32, (W, Wr), 1)
    row = lax.broadcasted_iota(jnp.int32, (W, Wr), 0)
    P = [(col == row * r + rj).astype(f32) for rj in range(r)]

    for h in range(th):  # static unroll: all slices static, LLO-visible
        xh = x_ref[:, h, :].astype(f32)  # (C, W)
        parts = []
        for ri in range(r):
            acc = None
            for rj in range(r):
                c0 = (ri * r + rj) * tg
                conv = jnp.dot(
                    w_ref[c0:c0 + tg, :].astype(f32), xh,
                    preferred_element_type=f32,
                )
                conv = conv + b_ref[c0:c0 + tg, :].astype(f32)  # (tg, W)
                term = jnp.dot(conv, P[rj], preferred_element_type=f32)  # (tg, Wr)
                acc = term if acc is None else acc + term
            parts.append(acc)
        row_h = jnp.concatenate(parts, axis=-1)  # (tg, r*W*r): (ri, w, rj) order
        # SiLU in f32: y * sigmoid(y) = y / (1 + exp(-y))
        row_h = row_h / (1.0 + jnp.exp(-row_h))
        o_ref[:, h * chunk:(h + 1) * chunk] = row_h.astype(o_ref.dtype)


# ----------------------------------------------------------------------------- tiling
def _choose_tiles(N, C, dim_out, H, W, r, itemsize, budget_bytes):
    # Output-channel-group tile: keep the full weight resident when possible,
    # capped by an in-register working-set heuristic (per-h live values).
    tg_cap = max(8, 8192 // max(W, 1))
    tg = _largest_divisor(dim_out, min(dim_out, tg_cap))

    def legal_th(th):
        if th < 1 or H % th != 0:
            return False
        if th % 8 != 0 and th != H:                      # x block second-minor
            return False
        if (th * r * r * W) % 128 != 0 and th != H:      # lane-dense out block
            return False
        return True

    def footprint(th):
        f32b = 4
        x_blk = C * _round_up(th, 8) * _round_up(W, 128) * itemsize
        w_blk = _round_up(tg * r * r, 8) * _round_up(C, 128) * itemsize
        b_blk = _round_up(tg * r * r, 8) * 128 * itemsize
        o_blk = _round_up(tg, 8) * _round_up(th * r * r * W, 128) * itemsize
        transient = (3 * r + 2) * tg * W * r * f32b + C * _round_up(W, 128) * f32b
        # Pallas double-buffers every streamed operand (inputs AND output).
        return 2 * (x_blk + w_blk + b_blk + o_blk) + transient

    # Spatial-row tile: biggest legal th (big DMAs amortize ~0.35us/step), but
    # bounded unroll length and VMEM footprint.
    th_cands = sorted(
        {d for d in range(1, H + 1) if H % d == 0 and d <= 64 and legal_th(d)},
        reverse=True,
    )
    if not th_cands:
        th_cands = [H]
    th = None
    for cand in th_cands:
        if footprint(cand) <= budget_bytes:
            th = cand
            break
    if th is None:
        th = th_cands[-1]

    # Keep both v7x TensorCores busy: grow the parallel grid when it is tiny.
    def grid_size(th_):
        return N * (dim_out // tg) * (H // th_)

    while grid_size(th) < 4:
        half = th // 2
        if legal_th(half):
            th = half
        else:
            break
    return tg, th


# ----------------------------------------------------------------------------- wrapper
def upsample_forward(x_nchw, w, b, factor=2, *, interpret=False):
    """Forward of Upsample: 1x1 conv -> SiLU -> PixelShuffle(factor), fused.

    x_nchw: [N, C, H, W]; w: [dim_out*factor^2, C]; b: [dim_out*factor^2].
    Returns [N, dim_out, H*factor, W*factor] (NCHW, like the PyTorch module).
    """
    N, C, H, W = x_nchw.shape
    r = int(factor)
    Cout = w.shape[0]
    assert Cout % (r * r) == 0
    dim_out = Cout // (r * r)

    vmem_cap = _vmem_capacity_bytes()
    vmem_limit = min(64 * 1024 * 1024,
                     max(32 * 1024 * 1024, vmem_cap - 16 * 1024 * 1024))
    budget = vmem_limit - 8 * 1024 * 1024

    tg, th = _choose_tiles(N, C, dim_out, H, W, r, x_nchw.dtype.itemsize, budget)
    n_gb = dim_out // tg
    n_hb = H // th

    # One-time, tiny re-ordering of conv-output channels from PyTorch's
    # (g, ri, rj) layout to the kernel's per-block (g_block, ri, rj, g_local).
    idx = jnp.arange(Cout).reshape(n_gb, tg, r * r)
    idx = jnp.transpose(idx, (0, 2, 1)).reshape(Cout)
    w_k = jnp.asarray(w)[idx]                       # (Cout, C)
    b_k = jnp.asarray(b)[idx].reshape(Cout, 1)      # (Cout, 1)

    kernel = functools.partial(_upsample_kernel, r=r, tg=tg, th=th, W=W, C=C)

    out_flat = pl.pallas_call(
        kernel,
        out_shape=jax.ShapeDtypeStruct((N, dim_out, H * r * r * W), x_nchw.dtype),
        grid_spec=pltpu.PrefetchScalarGridSpec(
            num_scalar_prefetch=0,
            grid=(N, n_gb, n_hb),   # spatial innermost -> weight block stays resident
            in_specs=[
                pl.BlockSpec((None, C, th, W), lambda n, g, hb: (n, 0, hb, 0)),
                pl.BlockSpec((tg * r * r, C), lambda n, g, hb: (g, 0)),
                pl.BlockSpec((tg * r * r, 1), lambda n, g, hb: (g, 0)),
            ],
            out_specs=pl.BlockSpec((None, tg, th * r * r * W),
                                   lambda n, g, hb: (n, g, hb)),
        ),
        compiler_params=pltpu.CompilerParams(
            dimension_semantics=("parallel", "parallel", "parallel"),
            vmem_limit_bytes=vmem_limit,
        ),
        interpret=interpret,
    )(x_nchw, w_k, b_k)

    # Free reshape: the flat last axis is already in (h, ri, w, rj) memory order.
    return out_flat.reshape(N, dim_out, H * r, W * r)


# ----------------------------------------------------------------------------- params / reference
def make_upsample_params(key, dim, dim_out=None, factor=2, dtype=jnp.float32):
    """Deterministic re-implementation of Upsample.__init__ / init_conv_."""
    dim_out = dim if dim_out is None else dim_out
    r2 = factor * factor
    fan_in = dim  # kaiming_uniform_ (a=0, gain=sqrt(2)), 1x1 kernel
    bound = math.sqrt(2.0) * math.sqrt(3.0 / fan_in)
    base_w = jax.random.uniform(
        key, (dim_out, dim), minval=-bound, maxval=bound, dtype=dtype
    )
    w = jnp.repeat(base_w, r2, axis=0)      # repeat 'o ... -> (o r) ...'
    b = jnp.zeros((dim_out * r2,), dtype=dtype)
    return w, b


def upsample_reference(x_nchw, w, b, factor=2):
    """Pure-JAX reference (same semantics as the PyTorch module)."""
    N, C, H, W = x_nchw.shape
    r = factor
    Cout = w.shape[0]
    dim_out = Cout // (r * r)
    y = jnp.einsum("nchw,oc->nohw", x_nchw, w) + b[None, :, None, None]
    y = y * jax.nn.sigmoid(y)  # SiLU
    y = y.reshape(N, dim_out, r, r, H, W)
    y = jnp.transpose(y, (0, 1, 4, 2, 5, 3))
    return y.reshape(N, dim_out, H * r, W * r)


# ----------------------------------------------------------------------------- demo
if __name__ == "__main__":
    key = jax.random.PRNGKey(0)
    k_w, k_x = jax.random.split(key)

    N, dim, H, W = 2, 4, 16, 16
    factor = 2
    dim_out = dim  # default(dim_out, dim)

    w, b = make_upsample_params(k_w, dim, dim_out, factor)
    x = jax.random.normal(k_x, (N, dim, H, W), dtype=jnp.float32)

    out = upsample_forward(x, w, b, factor)
    out = jax.block_until_ready(out)

    ref = upsample_reference(x, w, b, factor)
    assert out.shape == (N, dim_out, H * factor, W * factor)
    assert jnp.allclose(out, ref, atol=1e-5, rtol=1e-5), float(
        jnp.max(jnp.abs(out - ref))
    )

    print("KERNEL_OK")
</pallas_src>

<mosaic_0001>
module attributes {stable_mosaic.version = 11 : i64} {
  func.func @_upsample_kernel(%arg0: i32, %arg1: i32, %arg2: i32, %arg3: memref<1x4x8x16xf32, #tpu.memory_space<vmem>>, %arg4: memref<16x4xf32, #tpu.memory_space<vmem>>, %arg5: memref<16x1xf32, #tpu.memory_space<vmem>>, %arg6: memref<1x4x512xf32, #tpu.memory_space<vmem>>) attributes {dimension_semantics = [#tpu.dimension_semantics<parallel>, #tpu.dimension_semantics<parallel>, #tpu.dimension_semantics<parallel>], iteration_bounds = array<i64: 2, 1, 2>, scalar_prefetch = 0 : i64, scratch_operands = 0 : i64, tpu.core_type = #tpu.core_type<tc>, window_params = [{transform_indices = @transform_0, window_bounds = array<i64: 1, 4, 8, 16>}, {transform_indices = @transform_1, window_bounds = array<i64: 16, 4>}, {transform_indices = @transform_2, window_bounds = array<i64: 16, 1>}, {transform_indices = @transform_3, window_bounds = array<i64: 1, 4, 512>}]} {
    %0 = tpu.iota {dimensions = array<i32: 1>} : vector<16x32xi32>
    %1 = tpu.iota {dimensions = array<i32: 0>} : vector<16x32xi32>
    %c2_i32 = arith.constant 2 : i32
    %2 = vector.broadcast %c2_i32 : i32 to vector<16x32xi32>
    %3 = arith.muli %1, %2 : vector<16x32xi32>
    %c0_i32 = arith.constant 0 : i32
    %4 = vector.broadcast %c0_i32 : i32 to vector<16x32xi32>
    %5 = arith.addi %3, %4 : vector<16x32xi32>
    %6 = arith.cmpi eq, %0, %5 : vector<16x32xi32>
    %7 = arith.extui %6 : vector<16x32xi1> to vector<16x32xi32>
    %8 = arith.sitofp %7 : vector<16x32xi32> to vector<16x32xf32>
    %c2_i32_0 = arith.constant 2 : i32
    %9 = vector.broadcast %c2_i32_0 : i32 to vector<16x32xi32>
    %10 = arith.muli %1, %9 : vector<16x32xi32>
    %c1_i32 = arith.constant 1 : i32
    %11 = vector.broadcast %c1_i32 : i32 to vector<16x32xi32>
    %12 = arith.addi %10, %11 : vector<16x32xi32>
    %13 = arith.cmpi eq, %0, %12 : vector<16x32xi32>
    %14 = arith.extui %13 : vector<16x32xi1> to vector<16x32xi32>
    %15 = arith.sitofp %14 : vector<16x32xi32> to vector<16x32xf32>
    %c0 = arith.constant 0 : index
    %c0_1 = arith.constant 0 : index
    %c0_2 = arith.constant 0 : index
    %c0_3 = arith.constant 0 : index
    %16 = vector.load %arg3[%c0, %c0_1, %c0_2, %c0_3] : memref<1x4x8x16xf32, #tpu.memory_space<vmem>>, vector<1x4x1x16xf32>
    %17 = vector.shape_cast %16 : vector<1x4x1x16xf32> to vector<4x16xf32>
    %c0_4 = arith.constant 0 : index
    %c0_5 = arith.constant 0 : index
    %18 = vector.load %arg4[%c0_4, %c0_5] : memref<16x4xf32, #tpu.memory_space<vmem>>, vector<4x4xf32>
    %cst = arith.constant dense<0.000000e+00> : vector<4x16xf32>
    %19 = tpu.matmul %18, %17, %cst {dimension_numbers = #tpu.dot_dimension_numbers<[1], [0], [0], [1], [0, 0, 1, 1], [], []>} : vector<4x4xf32>, vector<4x16xf32>, vector<4x16xf32> -> vector<4x16xf32>
    %c0_6 = arith.constant 0 : index
    %c0_7 = arith.constant 0 : index
    %20 = vector.load %arg5[%c0_6, %c0_7] : memref<16x1xf32, #tpu.memory_space<vmem>>, vector<4x1xf32>
    %21 = vector.broadcast %20 : vector<4x1xf32> to vector<4x16xf32>
    %22 = arith.addf %19, %21 : vector<4x16xf32>
    %cst_8 = arith.constant dense<0.000000e+00> : vector<4x32xf32>
    %23 = tpu.matmul %22, %8, %cst_8 {dimension_numbers = #tpu.dot_dimension_numbers<[1], [0], [0], [1], [0, 0, 1, 1], [], []>} : vector<4x16xf32>, vector<16x32xf32>, vector<4x32xf32> -> vector<4x32xf32>
    %c4 = arith.constant 4 : index
    %c0_9 = arith.constant 0 : index
    %24 = vector.load %arg4[%c4, %c0_9] : memref<16x4xf32, #tpu.memory_space<vmem>>, vector<4x4xf32>
    %cst_10 = arith.constant dense<0.000000e+00> : vector<4x16xf32>
    %25 = tpu.matmul %24, %17, %cst_10 {dimension_numbers = #tpu.dot_dimension_numbers<[1], [0], [0], [1], [0, 0, 1, 1], [], []>} : vector<4x4xf32>, vector<4x16xf32>, vector<4x16xf32> -> vector<4x16xf32>
    %c4_11 = arith.constant 4 : index
    %c0_12 = arith.constant 0 : index
    %26 = vector.load %arg5[%c4_11, %c0_12] : memref<16x1xf32, #tpu.memory_space<vmem>>, vector<4x1xf32>
    %27 = vector.broadcast %26 : vector<4x1xf32> to vector<4x16xf32>
    %28 = arith.addf %25, %27 : vector<4x16xf32>
    %cst_13 = arith.constant dense<0.000000e+00> : vector<4x32xf32>
    %29 = tpu.matmul %28, %15, %cst_13 {dimension_numbers = #tpu.dot_dimension_numbers<[1], [0], [0], [1], [0, 0, 1, 1], [], []>} : vector<4x16xf32>, vector<16x32xf32>, vector<4x32xf32> -> vector<4x32xf32>
    %30 = arith.addf %23, %29 : vector<4x32xf32>
    %c8 = arith.constant 8 : index
    %c0_14 = arith.constant 0 : index
    %31 = vector.load %arg4[%c8, %c0_14] : memref<16x4xf32, #tpu.memory_space<vmem>>, vector<4x4xf32>
    %cst_15 = arith.constant dense<0.000000e+00> : vector<4x16xf32>
    %32 = tpu.matmul %31, %17, %cst_15 {dimension_numbers = #tpu.dot_dimension_numbers<[1], [0], [0], [1], [0, 0, 1, 1], [], []>} : vector<4x4xf32>, vector<4x16xf32>, vector<4x16xf32> -> vector<4x16xf32>
    %c8_16 = arith.constant 8 : index
    %c0_17 = arith.constant 0 : index
    %33 = vector.load %arg5[%c8_16, %c0_17] : memref<16x1xf32, #tpu.memory_space<vmem>>, vector<4x1xf32>
    %34 = vector.broadcast %33 : vector<4x1xf32> to vector<4x16xf32>
    %35 = arith.addf %32, %34 : vector<4x16xf32>
    %cst_18 = arith.constant dense<0.000000e+00> : vector<4x32xf32>
    %36 = tpu.matmul %35, %8, %cst_18 {dimension_numbers = #tpu.dot_dimension_numbers<[1], [0], [0], [1], [0, 0, 1, 1], [], []>} : vector<4x16xf32>, vector<16x32xf32>, vector<4x32xf32> -> vector<4x32xf32>
    %c12 = arith.constant 12 : index
    %c0_19 = arith.constant 0 : index
    %37 = vector.load %arg4[%c12, %c0_19] : memref<16x4xf32, #tpu.memory_space<vmem>>, vector<4x4xf32>
    %cst_20 = arith.constant dense<0.000000e+00> : vector<4x16xf32>
    %38 = tpu.matmul %37, %17, %cst_20 {dimension_numbers = #tpu.dot_dimension_numbers<[1], [0], [0], [1], [0, 0, 1, 1], [], []>} : vector<4x4xf32>, vector<4x16xf32>, vector<4x16xf32> -> vector<4x16xf32>
    %c12_21 = arith.constant 12 : index
    %c0_22 = arith.constant 0 : index
    %39 = vector.load %arg5[%c12_21, %c0_22] : memref<16x1xf32, #tpu.memory_space<vmem>>, vector<4x1xf32>
    %40 = vector.broadcast %39 : vector<4x1xf32> to vector<4x16xf32>
    %41 = arith.addf %38, %40 : vector<4x16xf32>
    %cst_23 = arith.constant dense<0.000000e+00> : vector<4x32xf32>
    %42 = tpu.matmul %41, %15, %cst_23 {dimension_numbers = #tpu.dot_dimension_numbers<[1], [0], [0], [1], [0, 0, 1, 1], [], []>} : vector<4x16xf32>, vector<16x32xf32>, vector<4x32xf32> -> vector<4x32xf32>
    %43 = arith.addf %36, %42 : vector<4x32xf32>
    %44 = tpu.concatenate %30, %43 in 1 : vector<4x32xf32>, vector<4x32xf32> -> vector<4x64xf32>
    %cst_24 = arith.constant 0.000000e+00 : f32
    %45 = vector.broadcast %cst_24 : f32 to vector<4x64xf32>
    %46 = arith.subf %45, %44 : vector<4x64xf32>
    %47 = math.exp %46 : vector<4x64xf32>
    %cst_25 = arith.constant 1.000000e+00 : f32
    %48 = vector.broadcast %cst_25 : f32 to vector<4x64xf32>
    %49 = arith.addf %48, %47 : vector<4x64xf32>
    %50 = arith.divf %44, %49 : vector<4x64xf32>
    %c0_26 = arith.constant 0 : index
    %c0_27 = arith.constant 0 : index
    %c0_28 = arith.constant 0 : index
    %51 = vector.load %arg6[%c0_26, %c0_27, %c0_28] : memref<1x4x512xf32, #tpu.memory_space<vmem>>, vector<1x4x64xf32>
    %52 = vector.shape_cast %51 : vector<1x4x64xf32> to vector<4x64xf32>
    %53 = vector.shape_cast %50 : vector<4x64xf32> to vector<1x4x64xf32>
    tpu.vector_store %arg6[%c0_26, %c0_27, %c0_28], %53 {strides = array<i32>} : memref<1x4x512xf32, #tpu.memory_space<vmem>>, vector<1x4x64xf32>,
    %c0_29 = arith.constant 0 : index
    %c0_30 = arith.constant 0 : index
    %c1 = arith.constant 1 : index
    %c0_31 = arith.constant 0 : index
    %54 = vector.load %arg3[%c0_29, %c0_30, %c1, %c0_31] : memref<1x4x8x16xf32, #tpu.memory_space<vmem>>, vector<1x4x1x16xf32>
    %55 = vector.shape_cast %54 : vector<1x4x1x16xf32> to vector<4x16xf32>
    %c0_32 = arith.constant 0 : index
    %c0_33 = arith.constant 0 : index
    %56 = vector.load %arg4[%c0_32, %c0_33] : memref<16x4xf32, #tpu.memory_space<vmem>>, vector<4x4xf32>
    %cst_34 = arith.constant dense<0.000000e+00> : vector<4x16xf32>
    %57 = tpu.matmul %56, %55, %cst_34 {dimension_numbers = #tpu.dot_dimension_numbers<[1], [0], [0], [1], [0, 0, 1, 1], [], []>} : vector<4x4xf32>, vector<4x16xf32>, vector<4x16xf32> -> vector<4x16xf32>
    %c0_35 = arith.constant 0 : index
    %c0_36 = arith.constant 0 : index
    %58 = vector.load %arg5[%c0_35, %c0_36] : memref<16x1xf32, #tpu.memory_space<vmem>>, vector<4x1xf32>
    %59 = vector.broadcast %58 : vector<4x1xf32> to vector<4x16xf32>
    %60 = arith.addf %57, %59 : vector<4x16xf32>
    %cst_37 = arith.constant dense<0.000000e+00> : vector<4x32xf32>
    %61 = tpu.matmul %60, %8, %cst_37 {dimension_numbers = #tpu.dot_dimension_numbers<[1], [0], [0], [1], [0, 0, 1, 1], [], []>} : vector<4x16xf32>, vector<16x32xf32>, vector<4x32xf32> -> vector<4x32xf32>
    %c4_38 = arith.constant 4 : index
    %c0_39 = arith.constant 0 : index
    %62 = vector.load %arg4[%c4_38, %c0_39] : memref<16x4xf32, #tpu.memory_space<vmem>>, vector<4x4xf32>
    %cst_40 = arith.constant dense<0.000000e+00> : vector<4x16xf32>
    %63 = tpu.matmul %62, %55, %cst_40 {dimension_numbers = #tpu.dot_dimension_numbers<[1], [0], [0], [1], [0, 0, 1, 1], [], []>} : vector<4x4xf32>, vector<4x16xf32>, vector<4x16xf32> -> vector<4x16xf32>
    %c4_41 = arith.constant 4 : index
    %c0_42 = arith.constant 0 : index
    %64 = vector.load %arg5[%c4_41, %c0_42] : memref<16x1xf32, #tpu.memory_space<vmem>>, vector<4x1xf32>
    %65 = vector.broadcast %64 : vector<4x1xf32> to vector<4x16xf32>
    %66 = arith.addf %63, %65 : vector<4x16xf32>
    %cst_43 = arith.constant dense<0.000000e+00> : vector<4x32xf32>
    %67 = tpu.matmul %66, %15, %cst_43 {dimension_numbers = #tpu.dot_dimension_numbers<[1], [0], [0], [1], [0, 0, 1, 1], [], []>} : vector<4x16xf32>, vector<16x32xf32>, vector<4x32xf32> -> vector<4x32xf32>
    %68 = arith.addf %61, %67 : vector<4x32xf32>
    %c8_44 = arith.constant 8 : index
    %c0_45 = arith.constant 0 : index
    %69 = vector.load %arg4[%c8_44, %c0_45] : memref<16x4xf32, #tpu.memory_space<vmem>>, vector<4x4xf32>
    %cst_46 = arith.constant dense<0.000000e+00> : vector<4x16xf32>
    %70 = tpu.matmul %69, %55, %cst_46 {dimension_numbers = #tpu.dot_dimension_numbers<[1], [0], [0], [1], [0, 0, 1, 1], [], []>} : vector<4x4xf32>, vector<4x16xf32>, vector<4x16xf32> -> vector<4x16xf32>
    %c8_47 = arith.constant 8 : index
    %c0_48 = arith.constant 0 : index
    %71 = vector.load %arg5[%c8_47, %c0_48] : memref<16x1xf32, #tpu.memory_space<vmem>>, vector<4x1xf32>
    %72 = vector.broadcast %71 : vector<4x1xf32> to vector<4x16xf32>
    %73 = arith.addf %70, %72 : vector<4x16xf32>
    %cst_49 = arith.constant dense<0.000000e+00> : vector<4x32xf32>
    %74 = tpu.matmul %73, %8, %cst_49 {dimension_numbers = #tpu.dot_dimension_numbers<[1], [0], [0], [1], [0, 0, 1, 1], [], []>} : vector<4x16xf32>, vector<16x32xf32>, vector<4x32xf32> -> vector<4x32xf32>
    %c12_50 = arith.constant 12 : index
    %c0_51 = arith.constant 0 : index
    %75 = vector.load %arg4[%c12_50, %c0_51] : memref<16x4xf32, #tpu.memory_space<vmem>>, vector<4x4xf32>
    %cst_52 = arith.constant dense<0.000000e+00> : vector<4x16xf32>
    %76 = tpu.matmul %75, %55, %cst_52 {dimension_numbers = #tpu.dot_dimension_numbers<[1], [0], [0], [1], [0, 0, 1, 1], [], []>} : vector<4x4xf32>, vector<4x16xf32>, vector<4x16xf32> -> vector<4x16xf32>
    %c12_53 = arith.constant 12 : index
    %c0_54 = arith.constant 0 : index
    %77 = vector.load %arg5[%c12_53, %c0_54] : memref<16x1xf32, #tpu.memory_space<vmem>>, vector<4x1xf32>
    %78 = vector.broadcast %77 : vector<4x1xf32> to vector<4x16xf32>
    %79 = arith.addf %76, %78 : vector<4x16xf32>
    %cst_55 = arith.constant dense<0.000000e+00> : vector<4x32xf32>
    %80 = tpu.matmul %79, %15, %cst_55 {dimension_numbers = #tpu.dot_dimension_numbers<[1], [0], [0], [1], [0, 0, 1, 1], [], []>} : vector<4x16xf32>, vector<16x32xf32>, vector<4x32xf32> -> vector<4x32xf32>
    %81 = arith.addf %74, %80 : vector<4x32xf32>
    %82 = tpu.concatenate %68, %81 in 1 : vector<4x32xf32>, vector<4x32xf32> -> vector<4x64xf32>
    %cst_56 = arith.constant 0.000000e+00 : f32
    %83 = vector.broadcast %cst_56 : f32 to vector<4x64xf32>
    %84 = arith.subf %83, %82 : vector<4x64xf32>
    %85 = math.exp %84 : vector<4x64xf32>
    %cst_57 = arith.constant 1.000000e+00 : f32
    %86 = vector.broadcast %cst_57 : f32 to vector<4x64xf32>
    %87 = arith.addf %86, %85 : vector<4x64xf32>
    %88 = arith.divf %82, %87 : vector<4x64xf32>
    %c0_58 = arith.constant 0 : index
    %c0_59 = arith.constant 0 : index
    %c64 = arith.constant 64 : index
    %89 = vector.load %arg6[%c0_58, %c0_59, %c64] : memref<1x4x512xf32, #tpu.memory_space<vmem>>, vector<1x4x64xf32>
    %90 = vector.shape_cast %89 : vector<1x4x64xf32> to vector<4x64xf32>
    %91 = vector.shape_cast %88 : vector<4x64xf32> to vector<1x4x64xf32>
    tpu.vector_store %arg6[%c0_58, %c0_59, %c64], %91 {strides = array<i32>} : memref<1x4x512xf32, #tpu.memory_space<vmem>>, vector<1x4x64xf32>,
    %c0_60 = arith.constant 0 : index
    %c0_61 = arith.constant 0 : index
    %c2 = arith.constant 2 : index
    %c0_62 = arith.constant 0 : index
    %92 = vector.load %arg3[%c0_60, %c0_61, %c2, %c0_62] : memref<1x4x8x16xf32, #tpu.memory_space<vmem>>, vector<1x4x1x16xf32>
    %93 = vector.shape_cast %92 : vector<1x4x1x16xf32> to vector<4x16xf32>
    %c0_63 = arith.constant 0 : index
    %c0_64 = arith.constant 0 : index
    %94 = vector.load %arg4[%c0_63, %c0_64] : memref<16x4xf32, #tpu.memory_space<vmem>>, vector<4x4xf32>
    %cst_65 = arith.constant dense<0.000000e+00> : vector<4x16xf32>
    %95 = tpu.matmul %94, %93, %cst_65 {dimension_numbers = #tpu.dot_dimension_numbers<[1], [0], [0], [1], [0, 0, 1, 1], [], []>} : vector<4x4xf32>, vector<4x16xf32>, vector<4x16xf32> -> vector<4x16xf32>
    %c0_66 = arith.constant 0 : index
    %c0_67 = arith.constant 0 : index
    %96 = vector.load %arg5[%c0_66, %c0_67] : memref<16x1xf32, #tpu.memory_space<vmem>>, vector<4x1xf32>
    %97 = vector.broadcast %96 : vector<4x1xf32> to vector<4x16xf32>
    %98 = arith.addf %95, %97 : vector<4x16xf32>
    %cst_68 = arith.constant dense<0.000000e+00> : vector<4x32xf32>
    %99 = tpu.matmul %98, %8, %cst_68 {dimension_numbers = #tpu.dot_dimension_numbers<[1], [0], [0], [1], [0, 0, 1, 1], [], []>} : vector<4x16xf32>, vector<16x32xf32>, vector<4x32xf32> -> vector<4x32xf32>
    %c4_69 = arith.constant 4 : index
    %c0_70 = arith.constant 0 : index
    %100 = vector.load %arg4[%c4_69, %c0_70] : memref<16x4xf32, #tpu.memory_space<vmem>>, vector<4x4xf32>
    %cst_71 = arith.constant dense<0.000000e+00> : vector<4x16xf32>
    %101 = tpu.matmul %100, %93, %cst_71 {dimension_numbers = #tpu.dot_dimension_numbers<[1], [0], [0], [1], [0, 0, 1, 1], [], []>} : vector<4x4xf32>, vector<4x16xf32>, vector<4x16xf32> -> vector<4x16xf32>
    %c4_72 = arith.constant 4 : index
    %c0_73 = arith.constant 0 : index
    %102 = vector.load %arg5[%c4_72, %c0_73] : memref<16x1xf32, #tpu.memory_space<vmem>>, vector<4x1xf32>
    %103 = vector.broadcast %102 : vector<4x1xf32> to vector<4x16xf32>
    %104 = arith.addf %101, %103 : vector<4x16xf32>
    %cst_74 = arith.constant dense<0.000000e+00> : vector<4x32xf32>
    %105 = tpu.matmul %104, %15, %cst_74 {dimension_numbers = #tpu.dot_dimension_numbers<[1], [0], [0], [1], [0, 0, 1, 1], [], []>} : vector<4x16xf32>, vector<16x32xf32>, vector<4x32xf32> -> vector<4x32xf32>
    %106 = arith.addf %99, %105 : vector<4x32xf32>
    %c8_75 = arith.constant 8 : index
    %c0_76 = arith.constant 0 : index
    %107 = vector.load %arg4[%c8_75, %c0_76] : memref<16x4xf32, #tpu.memory_space<vmem>>, vector<4x4xf32>
    %cst_77 = arith.constant dense<0.000000e+00> : vector<4x16xf32>
    %108 = tpu.matmul %107, %93, %cst_77 {dimension_numbers = #tpu.dot_dimension_numbers<[1], [0], [0], [1], [0, 0, 1, 1], [], []>} : vector<4x4xf32>, vector<4x16xf32>, vector<4x16xf32> -> vector<4x16xf32>
    %c8_78 = arith.constant 8 : index
    %c0_79 = arith.constant 0 : index
    %109 = vector.load %arg5[%c8_78, %c0_79] : memref<16x1xf32, #tpu.memory_space<vmem>>, vector<4x1xf32>
    %110 = vector.broadcast %109 : vector<4x1xf32> to vector<4x16xf32>
    %111 = arith.addf %108, %110 : vector<4x16xf32>
    %cst_80 = arith.constant dense<0.000000e+00> : vector<4x32xf32>
    %112 = tpu.matmul %111, %8, %cst_80 {dimension_numbers = #tpu.dot_dimension_numbers<[1], [0], [0], [1], [0, 0, 1, 1], [], []>} : vector<4x16xf32>, vector<16x32xf32>, vector<4x32xf32> -> vector<4x32xf32>
    %c12_81 = arith.constant 12 : index
    %c0_82 = arith.constant 0 : index
    %113 = vector.load %arg4[%c12_81, %c0_82] : memref<16x4xf32, #tpu.memory_space<vmem>>, vector<4x4xf32>
    %cst_83 = arith.constant dense<0.000000e+00> : vector<4x16xf32>
    %114 = tpu.matmul %113, %93, %cst_83 {dimension_numbers = #tpu.dot_dimension_numbers<[1], [0], [0], [1], [0, 0, 1, 1], [], []>} : vector<4x4xf32>, vector<4x16xf32>, vector<4x16xf32> -> vector<4x16xf32>
    %c12_84 = arith.constant 12 : index
    %c0_85 = arith.constant 0 : index
    %115 = vector.load %arg5[%c12_84, %c0_85] : memref<16x1xf32, #tpu.memory_space<vmem>>, vector<4x1xf32>
    %116 = vector.broadcast %115 : vector<4x1xf32> to vector<4x16xf32>
    %117 = arith.addf %114, %116 : vector<4x16xf32>
    %cst_86 = arith.constant dense<0.000000e+00> : vector<4x32xf32>
    %118 = tpu.matmul %117, %15, %cst_86 {dimension_numbers = #tpu.dot_dimension_numbers<[1], [0], [0], [1], [0, 0, 1, 1], [], []>} : vector<4x16xf32>, vector<16x32xf32>, vector<4x32xf32> -> vector<4x32xf32>
    %119 = arith.addf %112, %118 : vector<4x32xf32>
    %120 = tpu.concatenate %106, %119 in 1 : vector<4x32xf32>, vector<4x32xf32> -> vector<4x64xf32>
    %cst_87 = arith.constant 0.000000e+00 : f32
    %121 = vector.broadcast %cst_87 : f32 to vector<4x64xf32>
    %122 = arith.subf %121, %120 : vector<4x64xf32>
    %123 = math.exp %122 : vector<4x64xf32>
    %cst_88 = arith.constant 1.000000e+00 : f32
    %124 = vector.broadcast %cst_88 : f32 to vector<4x64xf32>
    %125 = arith.addf %124, %123 : vector<4x64xf32>
    %126 = arith.divf %120, %125 : vector<4x64xf32>
    %c0_89 = arith.constant 0 : index
    %c0_90 = arith.constant 0 : index
    %c128 = arith.constant 128 : index
    %127 = vector.load %arg6[%c0_89, %c0_90, %c128] : memref<1x4x512xf32, #tpu.memory_space<vmem>>, vector<1x4x64xf32>
    %128 = vector.shape_cast %127 : vector<1x4x64xf32> to vector<4x64xf32>
    %129 = vector.shape_cast %126 : vector<4x64xf32> to vector<1x4x64xf32>
    tpu.vector_store %arg6[%c0_89, %c0_90, %c128], %129 {strides = array<i32>} : memref<1x4x512xf32, #tpu.memory_space<vmem>>, vector<1x4x64xf32>,
    %c0_91 = arith.constant 0 : index
    %c0_92 = arith.constant 0 : index
    %c3 = arith.constant 3 : index
    %c0_93 = arith.constant 0 : index
    %130 = vector.load %arg3[%c0_91, %c0_92, %c3, %c0_93] : memref<1x4x8x16xf32, #tpu.memory_space<vmem>>, vector<1x4x1x16xf32>
    %131 = vector.shape_cast %130 : vector<1x4x1x16xf32> to vector<4x16xf32>
    %c0_94 = arith.constant 0 : index
    %c0_95 = arith.constant 0 : index
    %132 = vector.load %arg4[%c0_94, %c0_95] : memref<16x4xf32, #tpu.memory_space<vmem>>, vector<4x4xf32>
    %cst_96 = arith.constant dense<0.000000e+00> : vector<4x16xf32>
    %133 = tpu.matmul %132, %131, %cst_96 {dimension_numbers = #tpu.dot_dimension_numbers<[1], [0], [0], [1], [0, 0, 1, 1], [], []>} : vector<4x4xf32>, vector<4x16xf32>, vector<4x16xf32> -> vector<4x16xf32>
    %c0_97 = arith.constant 0 : index
    %c0_98 = arith.constant 0 : index
    %134 = vector.load %arg5[%c0_97, %c0_98] : memref<16x1xf32, #tpu.memory_space<vmem>>, vector<4x1xf32>
    %135 = vector.broadcast %134 : vector<4x1xf32> to vector<4x16xf32>
    %136 = arith.addf %133, %135 : vector<4x16xf32>
    %cst_99 = arith.constant dense<0.000000e+00> : vector<4x32xf32>
    %137 = tpu.matmul %136, %8, %cst_99 {dimension_numbers = #tpu.dot_dimension_numbers<[1], [0], [0], [1], [0, 0, 1, 1], [], []>} : vector<4x16xf32>, vector<16x32xf32>, vector<4x32xf32> -> vector<4x32xf32>
    %c4_100 = arith.constant 4 : index
    %c0_101 = arith.constant 0 : index
    %138 = vector.load %arg4[%c4_100, %c0_101] : memref<16x4xf32, #tpu.memory_space<vmem>>, vector<4x4xf32>
    %cst_102 = arith.constant dense<0.000000e+00> : vector<4x16xf32>
    %139 = tpu.matmul %138, %131, %cst_102 {dimension_numbers = #tpu.dot_dimension_numbers<[1], [0], [0], [1], [0, 0, 1, 1], [], []>} : vector<4x4xf32>, vector<4x16xf32>, vector<4x16xf32> -> vector<4x16xf32>
    %c4_103 = arith.constant 4 : index
    %c0_104 = arith.constant 0 : index
    %140 = vector.load %arg5[%c4_103, %c0_104] : memref<16x1xf32, #tpu.memory_space<vmem>>, vector<4x1xf32>
    %141 = vector.broadcast %140 : vector<4x1xf32> to vector<4x16xf32>
    %142 = arith.addf %139, %141 : vector<4x16xf32>
    %cst_105 = arith.constant dense<0.000000e+00> : vector<4x32xf32>
    %143 = tpu.matmul %142, %15, %cst_105 {dimension_numbers = #tpu.dot_dimension_numbers<[1], [0], [0], [1], [0, 0, 1, 1], [], []>} : vector<4x16xf32>, vector<16x32xf32>, vector<4x32xf32> -> vector<4x32xf32>
    %144 = arith.addf %137, %143 : vector<4x32xf32>
    %c8_106 = arith.constant 8 : index
    %c0_107 = arith.constant 0 : index
    %145 = vector.load %arg4[%c8_106, %c0_107] : memref<16x4xf32, #tpu.memory_space<vmem>>, vector<4x4xf32>
    %cst_108 = arith.constant dense<0.000000e+00> : vector<4x16xf32>
    %146 = tpu.matmul %145, %131, %cst_108 {dimension_numbers = #tpu.dot_dimension_numbers<[1], [0], [0], [1], [0, 0, 1, 1], [], []>} : vector<4x4xf32>, vector<4x16xf32>, vector<4x16xf32> -> vector<4x16xf32>
    %c8_109 = arith.constant 8 : index
    %c0_110 = arith.constant 0 : index
    %147 = vector.load %arg5[%c8_109, %c0_110] : memref<16x1xf32, #tpu.memory_space<vmem>>, vector<4x1xf32>
    %148 = vector.broadcast %147 : vector<4x1xf32> to vector<4x16xf32>
    %149 = arith.addf %146, %148 : vector<4x16xf32>
    %cst_111 = arith.constant dense<0.000000e+00> : vector<4x32xf32>
    %150 = tpu.matmul %149, %8, %cst_111 {dimension_numbers = #tpu.dot_dimension_numbers<[1], [0], [0], [1], [0, 0, 1, 1], [], []>} : vector<4x16xf32>, vector<16x32xf32>, vector<4x32xf32> -> vector<4x32xf32>
    %c12_112 = arith.constant 12 : index
    %c0_113 = arith.constant 0 : index
    %151 = vector.load %arg4[%c12_112, %c0_113] : memref<16x4xf32, #tpu.memory_space<vmem>>, vector<4x4xf32>
    %cst_114 = arith.constant dense<0.000000e+00> : vector<4x16xf32>
    %152 = tpu.matmul %151, %131, %cst_114 {dimension_numbers = #tpu.dot_dimension_numbers<[1], [0], [0], [1], [0, 0, 1, 1], [], []>} : vector<4x4xf32>, vector<4x16xf32>, vector<4x16xf32> -> vector<4x16xf32>
    %c12_115 = arith.constant 12 : index
    %c0_116 = arith.constant 0 : index
    %153 = vector.load %arg5[%c12_115, %c0_116] : memref<16x1xf32, #tpu.memory_space<vmem>>, vector<4x1xf32>
    %154 = vector.broadcast %153 : vector<4x1xf32> to vector<4x16xf32>
    %155 = arith.addf %152, %154 : vector<4x16xf32>
    %cst_117 = arith.constant dense<0.000000e+00> : vector<4x32xf32>
    %156 = tpu.matmul %155, %15, %cst_117 {dimension_numbers = #tpu.dot_dimension_numbers<[1], [0], [0], [1], [0, 0, 1, 1], [], []>} : vector<4x16xf32>, vector<16x32xf32>, vector<4x32xf32> -> vector<4x32xf32>
    %157 = arith.addf %150, %156 : vector<4x32xf32>
    %158 = tpu.concatenate %144, %157 in 1 : vector<4x32xf32>, vector<4x32xf32> -> vector<4x64xf32>
    %cst_118 = arith.constant 0.000000e+00 : f32
    %159 = vector.broadcast %cst_118 : f32 to vector<4x64xf32>
    %160 = arith.subf %159, %158 : vector<4x64xf32>
    %161 = math.exp %160 : vector<4x64xf32>
    %cst_119 = arith.constant 1.000000e+00 : f32
    %162 = vector.broadcast %cst_119 : f32 to vector<4x64xf32>
    %163 = arith.addf %162, %161 : vector<4x64xf32>
    %164 = arith.divf %158, %163 : vector<4x64xf32>
    %c0_120 = arith.constant 0 : index
    %c0_121 = arith.constant 0 : index
    %c192 = arith.constant 192 : index
    %165 = vector.load %arg6[%c0_120, %c0_121, %c192] : memref<1x4x512xf32, #tpu.memory_space<vmem>>, vector<1x4x64xf32>
    %166 = vector.shape_cast %165 : vector<1x4x64xf32> to vector<4x64xf32>
    %167 = vector.shape_cast %164 : vector<4x64xf32> to vector<1x4x64xf32>
    tpu.vector_store %arg6[%c0_120, %c0_121, %c192], %167 {strides = array<i32>} : memref<1x4x512xf32, #tpu.memory_space<vmem>>, vector<1x4x64xf32>,
    %c0_122 = arith.constant 0 : index
    %c0_123 = arith.constant 0 : index
    %c4_124 = arith.constant 4 : index
    %c0_125 = arith.constant 0 : index
    %168 = vector.load %arg3[%c0_122, %c0_123, %c4_124, %c0_125] : memref<1x4x8x16xf32, #tpu.memory_space<vmem>>, vector<1x4x1x16xf32>
    %169 = vector.shape_cast %168 : vector<1x4x1x16xf32> to vector<4x16xf32>
    %c0_126 = arith.constant 0 : index
    %c0_127 = arith.constant 0 : index
    %170 = vector.load %arg4[%c0_126, %c0_127] : memref<16x4xf32, #tpu.memory_space<vmem>>, vector<4x4xf32>
    %cst_128 = arith.constant dense<0.000000e+00> : vector<4x16xf32>
    %171 = tpu.matmul %170, %169, %cst_128 {dimension_numbers = #tpu.dot_dimension_numbers<[1], [0], [0], [1], [0, 0, 1, 1], [], []>} : vector<4x4xf32>, vector<4x16xf32>, vector<4x16xf32> -> vector<4x16xf32>
    %c0_129 = arith.constant 0 : index
    %c0_130 = arith.constant 0 : index
    %172 = vector.load %arg5[%c0_129, %c0_130] : memref<16x1xf32, #tpu.memory_space<vmem>>, vector<4x1xf32>
    %173 = vector.broadcast %172 : vector<4x1xf32> to vector<4x16xf32>
    %174 = arith.addf %171, %173 : vector<4x16xf32>
    %cst_131 = arith.constant dense<0.000000e+00> : vector<4x32xf32>
    %175 = tpu.matmul %174, %8, %cst_131 {dimension_numbers = #tpu.dot_dimension_numbers<[1], [0], [0], [1], [0, 0, 1, 1], [], []>} : vector<4x16xf32>, vector<16x32xf32>, vector<4x32xf32> -> vector<4x32xf32>
    %c4_132 = arith.constant 4 : index
    %c0_133 = arith.constant 0 : index
    %176 = vector.load %arg4[%c4_132, %c0_133] : memref<16x4xf32, #tpu.memory_space<vmem>>, vector<4x4xf32>
    %cst_134 = arith.constant dense<0.000000e+00> : vector<4x16xf32>
    %177 = tpu.matmul %176, %169, %cst_134 {dimension_numbers = #tpu.dot_dimension_numbers<[1], [0], [0], [1], [0, 0, 1, 1], [], []>} : vector<4x4xf32>, vector<4x16xf32>, vector<4x16xf32> -> vector<4x16xf32>
    %c4_135 = arith.constant 4 : index
    %c0_136 = arith.constant 0 : index
    %178 = vector.load %arg5[%c4_135, %c0_136] : memref<16x1xf32, #tpu.memory_space<vmem>>, vector<4x1xf32>
    %179 = vector.broadcast %178 : vector<4x1xf32> to vector<4x16xf32>
    %180 = arith.addf %177, %179 : vector<4x16xf32>
    %cst_137 = arith.constant dense<0.000000e+00> : vector<4x32xf32>
    %181 = tpu.matmul %180, %15, %cst_137 {dimension_numbers = #tpu.dot_dimension_numbers<[1], [0], [0], [1], [0, 0, 1, 1], [], []>} : vector<4x16xf32>, vector<16x32xf32>, vector<4x32xf32> -> vector<4x32xf32>
    %182 = arith.addf %175, %181 : vector<4x32xf32>
    %c8_138 = arith.constant 8 : index
    %c0_139 = arith.constant 0 : index
    %183 = vector.load %arg4[%c8_138, %c0_139] : memref<16x4xf32, #tpu.memory_space<vmem>>, vector<4x4xf32>
    %cst_140 = arith.constant dense<0.000000e+00> : vector<4x16xf32>
    %184 = tpu.matmul %183, %169, %cst_140 {dimension_numbers = #tpu.dot_dimension_numbers<[1], [0], [0], [1], [0, 0, 1, 1], [], []>} : vector<4x4xf32>, vector<4x16xf32>, vector<4x16xf32> -> vector<4x16xf32>
    %c8_141 = arith.constant 8 : index
    %c0_142 = arith.constant 0 : index
    %185 = vector.load %arg5[%c8_141, %c0_142] : memref<16x1xf32, #tpu.memory_space<vmem>>, vector<4x1xf32>
    %186 = vector.broadcast %185 : vector<4x1xf32> to vector<4x16xf32>
    %187 = arith.addf %184, %186 : vector<4x16xf32>
    %cst_143 = arith.constant dense<0.000000e+00> : vector<4x32xf32>
    %188 = tpu.matmul %187, %8, %cst_143 {dimension_numbers = #tpu.dot_dimension_numbers<[1], [0], [0], [1], [0, 0, 1, 1], [], []>} : vector<4x16xf32>, vector<16x32xf32>, vector<4x32xf32> -> vector<4x32xf32>
    %c12_144 = arith.constant 12 : index
    %c0_145 = arith.constant 0 : index
    %189 = vector.load %arg4[%c12_144, %c0_145] : memref<16x4xf32, #tpu.memory_space<vmem>>, vector<4x4xf32>
    %cst_146 = arith.constant dense<0.000000e+00> : vector<4x16xf32>
    %190 = tpu.matmul %189, %169, %cst_146 {dimension_numbers = #tpu.dot_dimension_numbers<[1], [0], [0], [1], [0, 0, 1, 1], [], []>} : vector<4x4xf32>, vector<4x16xf32>, vector<4x16xf32> -> vector<4x16xf32>
    %c12_147 = arith.constant 12 : index
    %c0_148 = arith.constant 0 : index
    %191 = vector.load %arg5[%c12_147, %c0_148] : memref<16x1xf32, #tpu.memory_space<vmem>>, vector<4x1xf32>
    %192 = vector.broadcast %191 : vector<4x1xf32> to vector<4x16xf32>
    %193 = arith.addf %190, %192 : vector<4x16xf32>
    %cst_149 = arith.constant dense<0.000000e+00> : vector<4x32xf32>
    %194 = tpu.matmul %193, %15, %cst_149 {dimension_numbers = #tpu.dot_dimension_numbers<[1], [0], [0], [1], [0, 0, 1, 1], [], []>} : vector<4x16xf32>, vector<16x32xf32>, vector<4x32xf32> -> vector<4x32xf32>
    %195 = arith.addf %188, %194 : vector<4x32xf32>
    %196 = tpu.concatenate %182, %195 in 1 : vector<4x32xf32>, vector<4x32xf32> -> vector<4x64xf32>
    %cst_150 = arith.constant 0.000000e+00 : f32
    %197 = vector.broadcast %cst_150 : f32 to vector<4x64xf32>
    %198 = arith.subf %197, %196 : vector<4x64xf32>
    %199 = math.exp %198 : vector<4x64xf32>
    %cst_151 = arith.constant 1.000000e+00 : f32
    %200 = vector.broadcast %cst_151 : f32 to vector<4x64xf32>
    %201 = arith.addf %200, %199 : vector<4x64xf32>
    %202 = arith.divf %196, %201 : vector<4x64xf32>
    %c0_152 = arith.constant 0 : index
    %c0_153 = arith.constant 0 : index
    %c256 = arith.constant 256 : index
    %203 = vector.load %arg6[%c0_152, %c0_153, %c256] : memref<1x4x512xf32, #tpu.memory_space<vmem>>, vector<1x4x64xf32>
    %204 = vector.shape_cast %203 : vector<1x4x64xf32> to vector<4x64xf32>
    %205 = vector.shape_cast %202 : vector<4x64xf32> to vector<1x4x64xf32>
    tpu.vector_store %arg6[%c0_152, %c0_153, %c256], %205 {strides = array<i32>} : memref<1x4x512xf32, #tpu.memory_space<vmem>>, vector<1x4x64xf32>,
    %c0_154 = arith.constant 0 : index
    %c0_155 = arith.constant 0 : index
    %c5 = arith.constant 5 : index
    %c0_156 = arith.constant 0 : index
    %206 = vector.load %arg3[%c0_154, %c0_155, %c5, %c0_156] : memref<1x4x8x16xf32, #tpu.memory_space<vmem>>, vector<1x4x1x16xf32>
    %207 = vector.shape_cast %206 : vector<1x4x1x16xf32> to vector<4x16xf32>
    %c0_157 = arith.constant 0 : index
    %c0_158 = arith.constant 0 : index
    %208 = vector.load %arg4[%c0_157, %c0_158] : memref<16x4xf32, #tpu.memory_space<vmem>>, vector<4x4xf32>
    %cst_159 = arith.constant dense<0.000000e+00> : vector<4x16xf32>
    %209 = tpu.matmul %208, %207, %cst_159 {dimension_numbers = #tpu.dot_dimension_numbers<[1], [0], [0], [1], [0, 0, 1, 1], [], []>} : vector<4x4xf32>, vector<4x16xf32>, vector<4x16xf32> -> vector<4x16xf32>
    %c0_160 = arith.constant 0 : index
    %c0_161 = arith.constant 0 : index
    %210 = vector.load %arg5[%c0_160, %c0_161] : memref<16x1xf32, #tpu.memory_space<vmem>>, vector<4x1xf32>
    %211 = vector.broadcast %210 : vector<4x1xf32> to vector<4x16xf32>
    %212 = arith.addf %209, %211 : vector<4x16xf32>
    %cst_162 = arith.constant dense<0.000000e+00> : vector<4x32xf32>
    %213 = tpu.matmul %212, %8, %cst_162 {dimension_numbers = #tpu.dot_dimension_numbers<[1], [0], [0], [1], [0, 0, 1, 1], [], []>} : vector<4x16xf32>, vector<16x32xf32>, vector<4x32xf32> -> vector<4x32xf32>
    %c4_163 = arith.constant 4 : index
    %c0_164 = arith.constant 0 : index
    %214 = vector.load %arg4[%c4_163, %c0_164] : memref<16x4xf32, #tpu.memory_space<vmem>>, vector<4x4xf32>
    %cst_165 = arith.constant dense<0.000000e+00> : vector<4x16xf32>
    %215 = tpu.matmul %214, %207, %cst_165 {dimension_numbers = #tpu.dot_dimension_numbers<[1], [0], [0], [1], [0, 0, 1, 1], [], []>} : vector<4x4xf32>, vector<4x16xf32>, vector<4x16xf32> -> vector<4x16xf32>
    %c4_166 = arith.constant 4 : index
    %c0_167 = arith.constant 0 : index
    %216 = vector.load %arg5[%c4_166, %c0_167] : memref<16x1xf32, #tpu.memory_space<vmem>>, vector<4x1xf32>
    %217 = vector.broadcast %216 : vector<4x1xf32> to vector<4x16xf32>
    %218 = arith.addf %215, %217 : vector<4x16xf32>
    %cst_168 = arith.constant dense<0.000000e+00> : vector<4x32xf32>
    %219 = tpu.matmul %218, %15, %cst_168 {dimension_numbers = #tpu.dot_dimension_numbers<[1], [0], [0], [1], [0, 0, 1, 1], [], []>} : vector<4x16xf32>, vector<16x32xf32>, vector<4x32xf32> -> vector<4x32xf32>
    %220 = arith.addf %213, %219 : vector<4x32xf32>
    %c8_169 = arith.constant 8 : index
    %c0_170 = arith.constant 0 : index
    %221 = vector.load %arg4[%c8_169, %c0_170] : memref<16x4xf32, #tpu.memory_space<vmem>>, vector<4x4xf32>
    %cst_171 = arith.constant dense<0.000000e+00> : vector<4x16xf32>
    %222 = tpu.matmul %221, %207, %cst_171 {dimension_numbers = #tpu.dot_dimension_numbers<[1], [0], [0], [1], [0, 0, 1, 1], [], []>} : vector<4x4xf32>, vector<4x16xf32>, vector<4x16xf32> -> vector<4x16xf32>
    %c8_172 = arith.constant 8 : index
    %c0_173 = arith.constant 0 : index
    %223 = vector.load %arg5[%c8_172, %c0_173] : memref<16x1xf32, #tpu.memory_space<vmem>>, vector<4x1xf32>
    %224 = vector.broadcast %223 : vector<4x1xf32> to vector<4x16xf32>
    %225 = arith.addf %222, %224 : vector<4x16xf32>
    %cst_174 = arith.constant dense<0.000000e+00> : vector<4x32xf32>
    %226 = tpu.matmul %225, %8, %cst_174 {dimension_numbers = #tpu.dot_dimension_numbers<[1], [0], [0], [1], [0, 0, 1, 1], [], []>} : vector<4x16xf32>, vector<16x32xf32>, vector<4x32xf32> -> vector<4x32xf32>
    %c12_175 = arith.constant 12 : index
    %c0_176 = arith.constant 0 : index
    %227 = vector.load %arg4[%c12_175, %c0_176] : memref<16x4xf32, #tpu.memory_space<vmem>>, vector<4x4xf32>
    %cst_177 = arith.constant dense<0.000000e+00> : vector<4x16xf32>
    %228 = tpu.matmul %227, %207, %cst_177 {dimension_numbers = #tpu.dot_dimension_numbers<[1], [0], [0], [1], [0, 0, 1, 1], [], []>} : vector<4x4xf32>, vector<4x16xf32>, vector<4x16xf32> -> vector<4x16xf32>
    %c12_178 = arith.constant 12 : index
    %c0_179 = arith.constant 0 : index
    %229 = vector.load %arg5[%c12_178, %c0_179] : memref<16x1xf32, #tpu.memory_space<vmem>>, vector<4x1xf32>
    %230 = vector.broadcast %229 : vector<4x1xf32> to vector<4x16xf32>
    %231 = arith.addf %228, %230 : vector<4x16xf32>
    %cst_180 = arith.constant dense<0.000000e+00> : vector<4x32xf32>
    %232 = tpu.matmul %231, %15, %cst_180 {dimension_numbers = #tpu.dot_dimension_numbers<[1], [0], [0], [1], [0, 0, 1, 1], [], []>} : vector<4x16xf32>, vector<16x32xf32>, vector<4x32xf32> -> vector<4x32xf32>
    %233 = arith.addf %226, %232 : vector<4x32xf32>
    %234 = tpu.concatenate %220, %233 in 1 : vector<4x32xf32>, vector<4x32xf32> -> vector<4x64xf32>
    %cst_181 = arith.constant 0.000000e+00 : f32
    %235 = vector.broadcast %cst_181 : f32 to vector<4x64xf32>
    %236 = arith.subf %235, %234 : vector<4x64xf32>
    %237 = math.exp %236 : vector<4x64xf32>
    %cst_182 = arith.constant 1.000000e+00 : f32
    %238 = vector.broadcast %cst_182 : f32 to vector<4x64xf32>
    %239 = arith.addf %238, %237 : vector<4x64xf32>
    %240 = arith.divf %234, %239 : vector<4x64xf32>
    %c0_183 = arith.constant 0 : index
    %c0_184 = arith.constant 0 : index
    %c320 = arith.constant 320 : index
    %241 = vector.load %arg6[%c0_183, %c0_184, %c320] : memref<1x4x512xf32, #tpu.memory_space<vmem>>, vector<1x4x64xf32>
    %242 = vector.shape_cast %241 : vector<1x4x64xf32> to vector<4x64xf32>
    %243 = vector.shape_cast %240 : vector<4x64xf32> to vector<1x4x64xf32>
    tpu.vector_store %arg6[%c0_183, %c0_184, %c320], %243 {strides = array<i32>} : memref<1x4x512xf32, #tpu.memory_space<vmem>>, vector<1x4x64xf32>,
    %c0_185 = arith.constant 0 : index
    %c0_186 = arith.constant 0 : index
    %c6 = arith.constant 6 : index
    %c0_187 = arith.constant 0 : index
    %244 = vector.load %arg3[%c0_185, %c0_186, %c6, %c0_187] : memref<1x4x8x16xf32, #tpu.memory_space<vmem>>, vector<1x4x1x16xf32>
    %245 = vector.shape_cast %244 : vector<1x4x1x16xf32> to vector<4x16xf32>
    %c0_188 = arith.constant 0 : index
    %c0_189 = arith.constant 0 : index
    %246 = vector.load %arg4[%c0_188, %c0_189] : memref<16x4xf32, #tpu.memory_space<vmem>>, vector<4x4xf32>
    %cst_190 = arith.constant dense<0.000000e+00> : vector<4x16xf32>
    %247 = tpu.matmul %246, %245, %cst_190 {dimension_numbers = #tpu.dot_dimension_numbers<[1], [0], [0], [1], [0, 0, 1, 1], [], []>} : vector<4x4xf32>, vector<4x16xf32>, vector<4x16xf32> -> vector<4x16xf32>
    %c0_191 = arith.constant 0 : index
    %c0_192 = arith.constant 0 : index
    %248 = vector.load %arg5[%c0_191, %c0_192] : memref<16x1xf32, #tpu.memory_space<vmem>>, vector<4x1xf32>
    %249 = vector.broadcast %248 : vector<4x1xf32> to vector<4x16xf32>
    %250 = arith.addf %247, %249 : vector<4x16xf32>
    %cst_193 = arith.constant dense<0.000000e+00> : vector<4x32xf32>
    %251 = tpu.matmul %250, %8, %cst_193 {dimension_numbers = #tpu.dot_dimension_numbers<[1], [0], [0], [1], [0, 0, 1, 1], [], []>} : vector<4x16xf32>, vector<16x32xf32>, vector<4x32xf32> -> vector<4x32xf32>
    %c4_194 = arith.constant 4 : index
    %c0_195 = arith.constant 0 : index
    %252 = vector.load %arg4[%c4_194, %c0_195] : memref<16x4xf32, #tpu.memory_space<vmem>>, vector<4x4xf32>
    %cst_196 = arith.constant dense<0.000000e+00> : vector<4x16xf32>
    %253 = tpu.matmul %252, %245, %cst_196 {dimension_numbers = #tpu.dot_dimension_numbers<[1], [0], [0], [1], [0, 0, 1, 1], [], []>} : vector<4x4xf32>, vector<4x16xf32>, vector<4x16xf32> -> vector<4x16xf32>
    %c4_197 = arith.constant 4 : index
    %c0_198 = arith.constant 0 : index
    %254 = vector.load %arg5[%c4_197, %c0_198] : memref<16x1xf32, #tpu.memory_space<vmem>>, vector<4x1xf32>
    %255 = vector.broadcast %254 : vector<4x1xf32> to vector<4x16xf32>
    %256 = arith.addf %253, %255 : vector<4x16xf32>
    %cst_199 = arith.constant dense<0.000000e+00> : vector<4x32xf32>
    %257 = tpu.matmul %256, %15, %cst_199 {dimension_numbers = #tpu.dot_dimension_numbers<[1], [0], [0], [1], [0, 0, 1, 1], [], []>} : vector<4x16xf32>, vector<16x32xf32>, vector<4x32xf32> -> vector<4x32xf32>
    %258 = arith.addf %251, %257 : vector<4x32xf32>
    %c8_200 = arith.constant 8 : index
    %c0_201 = arith.constant 0 : index
    %259 = vector.load %arg4[%c8_200, %c0_201] : memref<16x4xf32, #tpu.memory_space<vmem>>, vector<4x4xf32>
    %cst_202 = arith.constant dense<0.000000e+00> : vector<4x16xf32>
    %260 = tpu.matmul %259, %245, %cst_202 {dimension_numbers = #tpu.dot_dimension_numbers<[1], [0], [0], [1], [0, 0, 1, 1], [], []>} : vector<4x4xf32>, vector<4x16xf32>, vector<4x16xf32> -> vector<4x16xf32>
    %c8_203 = arith.constant 8 : index
    %c0_204 = arith.constant 0 : index
    %261 = vector.load %arg5[%c8_203, %c0_204] : memref<16x1xf32, #tpu.memory_space<vmem>>, vector<4x1xf32>
    %262 = vector.broadcast %261 : vector<4x1xf32> to vector<4x16xf32>
    %263 = arith.addf %260, %262 : vector<4x16xf32>
    %cst_205 = arith.constant dense<0.000000e+00> : vector<4x32xf32>
    %264 = tpu.matmul %263, %8, %cst_205 {dimension_numbers = #tpu.dot_dimension_numbers<[1], [0], [0], [1], [0, 0, 1, 1], [], []>} : vector<4x16xf32>, vector<16x32xf32>, vector<4x32xf32> -> vector<4x32xf32>
    %c12_206 = arith.constant 12 : index
    %c0_207 = arith.constant 0 : index
    %265 = vector.load %arg4[%c12_206, %c0_207] : memref<16x4xf32, #tpu.memory_space<vmem>>, vector<4x4xf32>
    %cst_208 = arith.constant dense<0.000000e+00> : vector<4x16xf32>
    %266 = tpu.matmul %265, %245, %cst_208 {dimension_numbers = #tpu.dot_dimension_numbers<[1], [0], [0], [1], [0, 0, 1, 1], [], []>} : vector<4x4xf32>, vector<4x16xf32>, vector<4x16xf32> -> vector<4x16xf32>
    %c12_209 = arith.constant 12 : index
    %c0_210 = arith.constant 0 : index
    %267 = vector.load %arg5[%c12_209, %c0_210] : memref<16x1xf32, #tpu.memory_space<vmem>>, vector<4x1xf32>
    %268 = vector.broadcast %267 : vector<4x1xf32> to vector<4x16xf32>
    %269 = arith.addf %266, %268 : vector<4x16xf32>
    %cst_211 = arith.constant dense<0.000000e+00> : vector<4x32xf32>
    %270 = tpu.matmul %269, %15, %cst_211 {dimension_numbers = #tpu.dot_dimension_numbers<[1], [0], [0], [1], [0, 0, 1, 1], [], []>} : vector<4x16xf32>, vector<16x32xf32>, vector<4x32xf32> -> vector<4x32xf32>
    %271 = arith.addf %264, %270 : vector<4x32xf32>
    %272 = tpu.concatenate %258, %271 in 1 : vector<4x32xf32>, vector<4x32xf32> -> vector<4x64xf32>
    %cst_212 = arith.constant 0.000000e+00 : f32
    %273 = vector.broadcast %cst_212 : f32 to vector<4x64xf32>
    %274 = arith.subf %273, %272 : vector<4x64xf32>
    %275 = math.exp %274 : vector<4x64xf32>
    %cst_213 = arith.constant 1.000000e+00 : f32
    %276 = vector.broadcast %cst_213 : f32 to vector<4x64xf32>
    %277 = arith.addf %276, %275 : vector<4x64xf32>
    %278 = arith.divf %272, %277 : vector<4x64xf32>
    %c0_214 = arith.constant 0 : index
    %c0_215 = arith.constant 0 : index
    %c384 = arith.constant 384 : index
    %279 = vector.load %arg6[%c0_214, %c0_215, %c384] : memref<1x4x512xf32, #tpu.memory_space<vmem>>, vector<1x4x64xf32>
    %280 = vector.shape_cast %279 : vector<1x4x64xf32> to vector<4x64xf32>
    %281 = vector.shape_cast %278 : vector<4x64xf32> to vector<1x4x64xf32>
    tpu.vector_store %arg6[%c0_214, %c0_215, %c384], %281 {strides = array<i32>} : memref<1x4x512xf32, #tpu.memory_space<vmem>>, vector<1x4x64xf32>,
    %c0_216 = arith.constant 0 : index
    %c0_217 = arith.constant 0 : index
    %c7 = arith.constant 7 : index
    %c0_218 = arith.constant 0 : index
    %282 = vector.load %arg3[%c0_216, %c0_217, %c7, %c0_218] : memref<1x4x8x16xf32, #tpu.memory_space<vmem>>, vector<1x4x1x16xf32>
    %283 = vector.shape_cast %282 : vector<1x4x1x16xf32> to vector<4x16xf32>
    %c0_219 = arith.constant 0 : index
    %c0_220 = arith.constant 0 : index
    %284 = vector.load %arg4[%c0_219, %c0_220] : memref<16x4xf32, #tpu.memory_space<vmem>>, vector<4x4xf32>
    %cst_221 = arith.constant dense<0.000000e+00> : vector<4x16xf32>
    %285 = tpu.matmul %284, %283, %cst_221 {dimension_numbers = #tpu.dot_dimension_numbers<[1], [0], [0], [1], [0, 0, 1, 1], [], []>} : vector<4x4xf32>, vector<4x16xf32>, vector<4x16xf32> -> vector<4x16xf32>
    %c0_222 = arith.constant 0 : index
    %c0_223 = arith.constant 0 : index
    %286 = vector.load %arg5[%c0_222, %c0_223] : memref<16x1xf32, #tpu.memory_space<vmem>>, vector<4x1xf32>
    %287 = vector.broadcast %286 : vector<4x1xf32> to vector<4x16xf32>
    %288 = arith.addf %285, %287 : vector<4x16xf32>
    %cst_224 = arith.constant dense<0.000000e+00> : vector<4x32xf32>
    %289 = tpu.matmul %288, %8, %cst_224 {dimension_numbers = #tpu.dot_dimension_numbers<[1], [0], [0], [1], [0, 0, 1, 1], [], []>} : vector<4x16xf32>, vector<16x32xf32>, vector<4x32xf32> -> vector<4x32xf32>
    %c4_225 = arith.constant 4 : index
    %c0_226 = arith.constant 0 : index
    %290 = vector.load %arg4[%c4_225, %c0_226] : memref<16x4xf32, #tpu.memory_space<vmem>>, vector<4x4xf32>
    %cst_227 = arith.constant dense<0.000000e+00> : vector<4x16xf32>
    %291 = tpu.matmul %290, %283, %cst_227 {dimension_numbers = #tpu.dot_dimension_numbers<[1], [0], [0], [1], [0, 0, 1, 1], [], []>} : vector<4x4xf32>, vector<4x16xf32>, vector<4x16xf32> -> vector<4x16xf32>
    %c4_228 = arith.constant 4 : index
    %c0_229 = arith.constant 0 : index
    %292 = vector.load %arg5[%c4_228, %c0_229] : memref<16x1xf32, #tpu.memory_space<vmem>>, vector<4x1xf32>
    %293 = vector.broadcast %292 : vector<4x1xf32> to vector<4x16xf32>
    %294 = arith.addf %291, %293 : vector<4x16xf32>
    %cst_230 = arith.constant dense<0.000000e+00> : vector<4x32xf32>
    %295 = tpu.matmul %294, %15, %cst_230 {dimension_numbers = #tpu.dot_dimension_numbers<[1], [0], [0], [1], [0, 0, 1, 1], [], []>} : vector<4x16xf32>, vector<16x32xf32>, vector<4x32xf32> -> vector<4x32xf32>
    %296 = arith.addf %289, %295 : vector<4x32xf32>
    %c8_231 = arith.constant 8 : index
    %c0_232 = arith.constant 0 : index
    %297 = vector.load %arg4[%c8_231, %c0_232] : memref<16x4xf32, #tpu.memory_space<vmem>>, vector<4x4xf32>
    %cst_233 = arith.constant dense<0.000000e+00> : vector<4x16xf32>
    %298 = tpu.matmul %297, %283, %cst_233 {dimension_numbers = #tpu.dot_dimension_numbers<[1], [0], [0], [1], [0, 0, 1, 1], [], []>} : vector<4x4xf32>, vector<4x16xf32>, vector<4x16xf32> -> vector<4x16xf32>
    %c8_234 = arith.constant 8 : index
    %c0_235 = arith.constant 0 : index
    %299 = vector.load %arg5[%c8_234, %c0_235] : memref<16x1xf32, #tpu.memory_space<vmem>>, vector<4x1xf32>
    %300 = vector.broadcast %299 : vector<4x1xf32> to vector<4x16xf32>
    %301 = arith.addf %298, %300 : vector<4x16xf32>
    %cst_236 = arith.constant dense<0.000000e+00> : vector<4x32xf32>
    %302 = tpu.matmul %301, %8, %cst_236 {dimension_numbers = #tpu.dot_dimension_numbers<[1], [0], [0], [1], [0, 0, 1, 1], [], []>} : vector<4x16xf32>, vector<16x32xf32>, vector<4x32xf32> -> vector<4x32xf32>
    %c12_237 = arith.constant 12 : index
    %c0_238 = arith.constant 0 : index
    %303 = vector.load %arg4[%c12_237, %c0_238] : memref<16x4xf32, #tpu.memory_space<vmem>>, vector<4x4xf32>
    %cst_239 = arith.constant dense<0.000000e+00> : vector<4x16xf32>
    %304 = tpu.matmul %303, %283, %cst_239 {dimension_numbers = #tpu.dot_dimension_numbers<[1], [0], [0], [1], [0, 0, 1, 1], [], []>} : vector<4x4xf32>, vector<4x16xf32>, vector<4x16xf32> -> vector<4x16xf32>
    %c12_240 = arith.constant 12 : index
    %c0_241 = arith.constant 0 : index
    %305 = vector.load %arg5[%c12_240, %c0_241] : memref<16x1xf32, #tpu.memory_space<vmem>>, vector<4x1xf32>
    %306 = vector.broadcast %305 : vector<4x1xf32> to vector<4x16xf32>
    %307 = arith.addf %304, %306 : vector<4x16xf32>
    %cst_242 = arith.constant dense<0.000000e+00> : vector<4x32xf32>
    %308 = tpu.matmul %307, %15, %cst_242 {dimension_numbers = #tpu.dot_dimension_numbers<[1], [0], [0], [1], [0, 0, 1, 1], [], []>} : vector<4x16xf32>, vector<16x32xf32>, vector<4x32xf32> -> vector<4x32xf32>
    %309 = arith.addf %302, %308 : vector<4x32xf32>
    %310 = tpu.concatenate %296, %309 in 1 : vector<4x32xf32>, vector<4x32xf32> -> vector<4x64xf32>
    %cst_243 = arith.constant 0.000000e+00 : f32
    %311 = vector.broadcast %cst_243 : f32 to vector<4x64xf32>
    %312 = arith.subf %311, %310 : vector<4x64xf32>
    %313 = math.exp %312 : vector<4x64xf32>
    %cst_244 = arith.constant 1.000000e+00 : f32
    %314 = vector.broadcast %cst_244 : f32 to vector<4x64xf32>
    %315 = arith.addf %314, %313 : vector<4x64xf32>
    %316 = arith.divf %310, %315 : vector<4x64xf32>
    %c0_245 = arith.constant 0 : index
    %c0_246 = arith.constant 0 : index
    %c448 = arith.constant 448 : index
    %317 = vector.load %arg6[%c0_245, %c0_246, %c448] : memref<1x4x512xf32, #tpu.memory_space<vmem>>, vector<1x4x64xf32>
    %318 = vector.shape_cast %317 : vector<1x4x64xf32> to vector<4x64xf32>
    %319 = vector.shape_cast %316 : vector<4x64xf32> to vector<1x4x64xf32>
    tpu.vector_store %arg6[%c0_245, %c0_246, %c448], %319 {strides = array<i32>} : memref<1x4x512xf32, #tpu.memory_space<vmem>>, vector<1x4x64xf32>,
    return
  }
  func.func @transform_0(%arg0: i32, %arg1: i32, %arg2: i32) -> (i32, i32, i32, i32) {
    %c0_i32 = arith.constant 0 : i32
    %c0_i32_0 = arith.constant 0 : i32
    %c0_i32_1 = arith.constant 0 : i32
    return %arg0, %c0_i32, %arg2, %c0_i32_0 : i32, i32, i32, i32
  }
  func.func @transform_1(%arg0: i32, %arg1: i32, %arg2: i32) -> (i32, i32) {
    %c0_i32 = arith.constant 0 : i32
    %c0_i32_0 = arith.constant 0 : i32
    return %arg1, %c0_i32 : i32, i32
  }
  func.func @transform_2(%arg0: i32, %arg1: i32, %arg2: i32) -> (i32, i32) {
    %c0_i32 = arith.constant 0 : i32
    %c0_i32_0 = arith.constant 0 : i32
    return %arg1, %c0_i32 : i32, i32
  }
  func.func @transform_3(%arg0: i32, %arg1: i32, %arg2: i32) -> (i32, i32, i32) {
    %c0_i32 = arith.constant 0 : i32
    return %arg0, %arg1, %arg2 : i32, i32, i32
  }
}

</mosaic_0001>

<bundles_post_ra>
// kernel: tpu_custom_call.1
= control target key start
LH: loop header
LB: loop body
LE: loop exit
PB: predicated region body
PF: predicated region fallthrough
CT: control target
= control target key end

     0   :  { %8 = vsyncpa [#allocation3], 0  ;;  %s7591_s0 = inlined_call_operand.hbm [shape: f32[2,4,16,16], index: 0, kind: input, shape index: {}]   ;;  %s7592_s1 = inlined_call_operand.vmem [shape: f32[16,4], index: 1, kind: input, shape index: {}]   ;;  %s7593_s2 = inlined_call_operand.vmem [shape: f32[16,1], index: 2, kind: input, shape index: {}]   ;;  %s7594_s3 = inlined_call_operand.hbm [shape: f32[2,4,1024], index: 3, kind: output, shape index: {}]  }
   0x1   :  { %10 = vsyncpa [#allocation3 + $0x1], 0 }
   0x2   :  { %11 = vsyncpa [#allocation4], 0 }
   0x3   :  { %13 = vsyncpa [#allocation4 + $0x1], 0  ;;  %s6570_s12 = smov 0   ;;  %s6572_s13 = smov 0  }
   0x4   :  { %s6574_s14 = smov 0   ;;  %s6576_s15 = smov 0  }
   0x5   :  { %s6578_s16 = smov 0   ;;  %s6580_s17 = smov 0  }
   0x6   :  { %s6582_s18 = smov 0   ;;  %s6584_s19 = smov 0  }
   0x7 LB: > { %s5566_s20 = sadd.s32 4294967295, %s6537_s19   ;;  %s5567_s21 = sadd.s32 4294967294, %s6537_s19   ;;  %s6537_s19 = sphi %s6584_s19, %s19_s19   ;;  %s6533_s18 = sphi %s6582_s18, %s7620_s18   ;;  %s6529_s17 = sphi %s6580_s17, %s7619_s17   ;;  %s6525_s16 = sphi %s6578_s16, %s7618_s16   ;;  %s6521_s15 = sphi %s6576_s15, %s7617_s15   ;;  %s6517_s14 = sphi %s6574_s14, %s7616_s14   ;;  %s6513_s13 = sphi %s6572_s13, %s7615_s13   ;;  %s6509_s12 = sphi %s6570_s12, %s7614_s12  }
   0x8   : > { %s31_s22 = sadd.s32 1, %s6529_s17  ;;  %s38_s23 = sadd.s32 1, %s6533_s18 }
   0x9   : > { %p32_p0 = scmp.ge.s32.totalorder %s31_s22, 2  ;;  %s47_s24 = sadd.s32 1, %s6517_s14 }
   0xa   : > { %p54_p1 = scmp.ne.s32.totalorder %s6517_s14, %s6513_s13  ;;  %p55_p2 = scmp.eq.s32.totalorder %s6537_s19, 0 }
   0xb   : > { %s7622_s22 = smov (%p32_p0, %s31_s22), 0  ;;  %s7624_s23 = smov (!%p32_p0, %s38_s23), %s6533_s18 }
   0xc   : > { %7597 = sst [smem:[#allocation8_spill]] %s7622_s22  ;;  %s43_s25 = ssub.s32 %s6529_s17, %s7622_s22 }
   0xd   : > { %p6623_p3 = por %p55_p2, %p54_p1  ;;  %p40_p4 = scmp.ge.s32.totalorder %s7624_s23, 2 }
   0xe   : > { %p60_p5 = scmp.ne.s32.totalorder %s6513_s13, %s6509_s12  ;;  %p61_p6 = scmp.eq.s32.totalorder %s5566_s20, 0 }
   0xf   : > { %p140_p7 = scmp.eq.s32.totalorder %s5566_s20, 3  ;;  %s7626_s23 = smov (%p40_p4, %s7624_s23), 0 }
  0x10   : > { %7599 = sst [smem:[#allocation9_spill]] %s7626_s23  ;;  %p6631_p8 = por %p61_p6, %p60_p5 }
  0x11   : > { %p6635_p9 = por %p140_p7, %p54_p1  ;;  %s42_s29 = ssub.s32 %s6533_s18, %s7626_s23 }
  0x12   : > { %p146_p10 = scmp.eq.s32.totalorder %s5567_s21, 3  ;;  %s44_s30 = sor.u32 %s43_s25, %s42_s29 }
  0x13   : > { %p45_p11 = scmp.eq.s32.totalorder %s44_s30, 0  ;;  %p6304_p13 = scmp.lt.s32.totalorder %s6537_s19, 4 }
  0x14   : > { %p6641_p12 = por %p146_p10, %p60_p5  ;;  %s184_s5 = sand.u32 1, %s6517_s14  }
  0x15   : > { %s6648_s6 = scalar_select %p45_p11, %s6517_s14, %s47_s24  }
  0x16   : > { %s5572_s7 = sshll.u32 %s184_s5, 5  ;;  %s5573_s8 = sshll.u32 %s6533_s18, 3 }
  0x17   : > { %s193_s9 = sadd.s32 %s6529_s17, %s5573_s8  ;;  %s188_s10 = scalar_lea.vmem [#allocation2], %s5572_s7 }
  0x18   : > { %s196_s11 = sshll.u32 %s188_s10, 4  ;;  %s5574_s20 = sshll.u32 %s193_s9, 7  ;;  %s197_s11 = int_to_ptr.vmem [resolvable:$true] %s196_s11 }
  0x19   : > { %s195_s21 = scalar_lea.hbm %s7591_s0, %s5574_s20  ;;  %p6657_p0 = pnand %p6304_p13, %p6623_p3 }
  0x1a   : > { %s185_s29 = scalar_lea.sflag [#allocation3], %s184_s5  ;;  %s6426_s24 = scalar_lea.vmem %s197_s11, 512 }
  0x1b   : > { %p6415_p1 = pneg %p6657_p0  ;;  %p6427_p2 = scmp.ne.s32.totalorder %s197_s11, %s6426_s24 }
  0x1c   : > { %s6539_s30 = smov [#allocation2]  }
  0x1d   : > { %p6429_p4 = pnand %p6427_p2, %p6415_p1  ;;  %s6431_s7 = sshll.u32 %s6539_s30, 4  ;;  %s6432_s7 = int_to_ptr.vmem [resolvable:$false] %s6431_s7 }
  0x1e   : > { %s6433_s8 = scalar_lea.vmem %s6432_s7, 1024  ;;  %p6434_p6 = scmp.lt.s32.totalorder %s197_s11, %s6432_s7 }
  0x1f   : > { %p6430_p5 = pneg %p6429_p4  ;;  %p6435_p7 = scmp.lt.s32.totalorder %s6433_s8, %s6426_s24 }
  0x21   : > { %p6436_p10 = por %p6435_p7, %p6434_p6 }
  0x23   : > { %p6437_p11 = pnand %p6436_p10, %p6430_p5 }
  0x25   : > { %6440 = shalt.err (!%p6437_p11)
}
  0x26   : > { %s6540_s22 = smov 256   ;;  %s6541_s23 = smov 128  }
  0x27   : > { %s6542_s26 = smov 8   ;;  %p5575_p3 = scmp.ge.s32.totalorder %s6537_s19, 1 }
  0x28   : > { %6299 = dma.hbm_to_vmem [thread:$0]  (!%p6657_p0), %s195_s21, 512, %s197_s11, %s185_s29, %s6540_s22, %s6541_s23, %s6542_s26  }
  0x29   : > { %p204_p13 = scmp.lt.s32.totalorder %s6537_s19, 5 }
  0x2b   : > { %p205_p1 = pnand %p5575_p3, %p204_p13 }
  0x2c   : > { %s6668_s5 = sand.u32 (!%p205_p1), 1, %s6513_s13  }
  0x2d   : > { %208 = sbr.rel (%p205_p1) target bundleno = 3715 (0xe83), region = 32  ;;  %s5576_s9 = sshll.u32 (!%p205_p1), %s6668_s5, 5 }
  0x2e   : > { %s211_s10 = scalar_lea.sflag (!%p205_p1), [#allocation3], %s6668_s5  ;;  %s6672_s20 = scalar_lea.vmem (!%p205_p1), [#allocation2], %s5576_s9 }
  0x32   : > { %6500 = dma.done.wait (%p6631_p8), %s211_s10, 512  }
  0x33   : > { %6502 = vsyncadd (%p6631_p8), %s211_s10, 4294966784  ;;  %v6543_v0 = vmov 0.0   ;;  %vm6544_vm0 = vmmov 0   ;;  %v6545_v1 = vmov 0   ;;  %vm297_vm1 = vcmask 1041409   ;;  %s6547_s27 = smov 32  }
  0x34   : > { %5908 = vmatprep.subr.mxu0 %v6543_v0  ;;  %5913 = vmatprep.subr.mxu1 %v6543_v0  ;;  %v281_v2 = vld [vmem:[%s6672_s20] sm:$0x1]  ;;  %v282_v3 = vld [vmem:[%s6672_s20 + $0x8] sm:$0x1]  ;;  %v283_v4 = vld [vmem:[%s6672_s20 + $0x10] sm:$0x1]  ;;  %v260_v29 = vlaneseq }
  0x35   : > { %5910 = vmatprep.mubr.msk.f32.mxu0 %vm6544_vm0, %v6543_v0  ;;  %5915 = vmatprep.mubr.msk.f32.mxu1 %vm6544_vm0, %v6543_v0  ;;  %v284_v5 = vld [vmem:[%s6672_s20 + $0x18] sm:$0x1]  ;;  %v296_v6 = vrot.slane %v282_v3, 7  ;;  %v299_v7 = vrot.slane %v283_v4, 6  ;;  %vm300_vm2 = vcmask 1042434   ;;  %vm303_vm3 = vcmask 1043459  }
  0x36   : > { %6379 = vset.pattern.permute.xlu0 %v6545_v1  ;;  %6380 = vset.pattern.permute.xlu1 %v6545_v1  ;;  %v302_v8 = vrot.slane %v284_v5, 5  ;;  %v286_v9 = vld [vmem:[%s7593_s2] sm:$0xf]  ;;  %vm309_vm4 = vcmask 1043456   ;;  %vm305_vm5 = vcmask 31744   ;;  %v263_v31 = vshrl.u32 %v260_v29, 7 }
  0x37   : > { %v298_v10 = vsel %vm297_vm1, %v296_v6, %v281_v2  ;;  %289 = vperm.xlu0 %6379, %v286_v9   ;;  %v285_v12 = vld [vmem:[%s7592_s1] sm:$0xf]  ;;  %v382_v13 = vld [vmem:[%s7592_s1 + $0x4] sm:$0xf]  ;;  %v1252_v17 = vld [vmem:[%s7593_s2 + $0x8] sm:$0xf] }
  0x38   : > { %v301_v11 = vsel %vm300_vm2, %v299_v7, %v298_v10  ;;  %v383_v15 = vld [vmem:[%s7593_s2 + $0x4] sm:$0xf]  ;;  %v934_v16 = vld [vmem:[%s7593_s2] sm:$0xf]  ;;  %v1897_v19 = vld [vmem:[%s7593_s2 + $0x8] sm:$0xf] }
  0x39   : > { %v6700_v14 = vsel %vm303_vm3, %v302_v8, %v301_v11  ;;  %v1579_v18 = vld [vmem:[%s7593_s2] sm:$0xf]  ;;  %v2537_v21 = vld [vmem:[%s7593_s2 + $0x8] sm:$0xf]  ;;  %v261_v32 = vand.u32 127, %v260_v29  ;;  %v264_v33 = vadd.s32 8, %v263_v31 }
  0x3a   : > { %5909 = vmatpush3.msk.msra.mxu0 %vm309_vm4, %v6700_v14  ;;  %5914 = vmatpush3.msk.msra.mxu1 %vm309_vm4, %v6700_v14  ;;  %v2219_v20 = vld [vmem:[%s7593_s2] sm:$0xf]  ;;  %v3181_v23 = vld [vmem:[%s7593_s2 + $0x8] sm:$0xf]  ;;  %v6546_v37 = vmov 1.0   ;;  %v265_v38 = vmul.u32 2, %v263_v31 }
  0x3b   : > { %5911 = vmatmul.mubr.msk.f32.vlgmr.msra.gmra.mxu0 %vm305_vm5, %v285_v12  ;;  %5916 = vmatmul.mubr.msk.f32.vlgmr.msra.gmra.mxu1 %vm305_vm5, %v382_v13  ;;  %v2863_v22 = vld [vmem:[%s7593_s2] sm:$0xf]  ;;  %v3821_v25 = vld [vmem:[%s7593_s2 + $0x8] sm:$0xf]  ;;  %v266_v34 = vmul.u32 2, %v264_v33  ;;  %vm462_vm10 = vcmask 130048  }
  0x3c   : > { %386 = vperm.xlu0 %6379, %v383_v15   ;;  %5918 = vmatprep.subr.mxu0 %v6543_v0  ;;  %v3503_v24 = vld [vmem:[%s7593_s2] sm:$0xf]  ;;  %v4465_v27 = vld [vmem:[%s7593_s2 + $0x8] sm:$0xf]  ;;  %v273_v40 = vadd.s32 1, %v265_v38  ;;  %vm6779_vm9 = vcmp.eq.s32.totalorder %v261_v32, %v265_v38  ;;  %vm919_vm11 = vcmask 261120  }
  0x3d   : > { %5925 = vmatprep.subr.mxu1 %v6543_v0  ;;  %5922 = vmatprep.mubr.msk.f32.mxu0 %vm6544_vm0, %v6543_v0  ;;  %v4147_v26 = vld [vmem:[%s7593_s2] sm:$0xf]  ;;  %v5105_v30 = vld [vmem:[%s7593_s2 + $0x8] sm:$0xf]  ;;  %v274_v35 = vadd.s32 1, %v266_v34  ;;  %vm6759_vm6 = vcmp.eq.s32.totalorder %v261_v32, %v266_v34  ;;  %s6548_s26 = smov 64  }
  0x3e   : > { %5929 = vmatprep.mubr.msk.f32.mxu1 %vm6544_vm0, %v6543_v0  ;;  %v4787_v28 = vld [vmem:[%s7593_s2] sm:$0xf]  ;;  %5926 = vmatpush3.msk.msra.mxu1 %vm6759_vm6, %v6546_v37  ;;  %vm6775_vm8 = vcmp.eq.s32.totalorder %v261_v32, %v273_v40  ;;  %v610_v43 = vld [vmem:[%s7593_s2 + $0x8] sm:$0xf]  ;;  %v690_v44 = vld [vmem:[%s7593_s2 + $0xc] sm:$0xf] }
  0x3f   : > { %vm6766_vm7 = vcmp.eq.s32.totalorder %v261_v32, %v274_v35  ;;  %5927 = vmatprep.subr.mxu1 %v6543_v0  ;;  %613 = vperm.xlu1 %6380, %v610_v43   ;;  %v1026_v45 = vld [vmem:[%s7593_s2 + $0x4] sm:$0xf]  ;;  %v1332_v46 = vld [vmem:[%s7593_s2 + $0xc] sm:$0xf]  ;;  %v609_v4 = vld [vmem:[%s7592_s1 + $0x8] sm:$0xf] }
  0x40   : > { %937 = vperm.xlu0 %6379, %v934_v16   ;;  %5919 = vmatpush3.msk.msra.mxu0 %vm6766_vm7, %v6546_v37  ;;  %v1671_v47 = vld [vmem:[%s7593_s2 + $0x4] sm:$0xf]  ;;  %v1977_v48 = vld [vmem:[%s7593_s2 + $0xc] sm:$0xf]  ;;  %v930_v6 = vld [vmem:[%s6672_s20 + $0x9] sm:$0x1] }
  0x41   : > { %5920 = vmatprep.subr.mxu0 %v6543_v0  ;;  %5928 = vmatpush3.msk.msra.mxu1 %vm6779_vm9, %v6546_v37  ;;  %v2311_v49 = vld [vmem:[%s7593_s2 + $0x4] sm:$0xf]  ;;  %v2617_v50 = vld [vmem:[%s7593_s2 + $0xc] sm:$0xf]  ;;  %v931_v7 = vld [vmem:[%s6672_s20 + $0x11] sm:$0x1] }
  0x42   : > { %5921 = vmatpush3.msk.msra.mxu0 %vm6775_vm8, %v6546_v37  ;;  %5937 = vmatprep.subr.mxu1 %v6543_v0  ;;  %v2955_v51 = vld [vmem:[%s7593_s2 + $0x4] sm:$0xf]  ;;  %v3261_v52 = vld [vmem:[%s7593_s2 + $0xc] sm:$0xf]  ;;  %v944_v8 = vrot.slane %v930_v6, 7  ;;  %v946_v12 = vrot.slane %v931_v7, 6 }
  0x43   : > { %5932 = vmatprep.subr.mxu0 %v6543_v0  ;;  %693 = vperm.xlu1 %6380, %v690_v44   ;;  %v3595_v53 = vld [vmem:[%s7593_s2 + $0x4] sm:$0xf]  ;;  %v3901_v54 = vld [vmem:[%s7593_s2 + $0xc] sm:$0xf]  ;;  %v929_v9 = vld [vmem:[%s6672_s20 + $0x1] sm:$0x1] }
  0x44   : > { %1255 = vperm.xlu0 %6379, %v1252_v17   ;;  %v4239_v55 = vld [vmem:[%s7593_s2 + $0x4] sm:$0xf]  ;;  %v4545_v56 = vld [vmem:[%s7593_s2 + $0xc] sm:$0xf]  ;;  %v932_v11 = vld [vmem:[%s6672_s20 + $0x19] sm:$0x1]  ;;  %v945_v13 = vsel %vm297_vm1, %v944_v8, %v929_v9 }
  0x45   : > { %v4879_v57 = vld [vmem:[%s7593_s2 + $0x4] sm:$0xf]  ;;  %v5185_v58 = vld [vmem:[%s7593_s2 + $0xc] sm:$0xf]  ;;  %v948_v17 = vrot.slane %v932_v11, 5  ;;  %s5577_s9 = sshll.u32 %s6668_s5, 4 }
  0x46   : > { %v689_v5 = vld [vmem:[%s7592_s1 + $0xc] sm:$0xf]  ;;  %v933_v29 = vld [vmem:[%s7592_s1] sm:$0xf]  ;;  %vm927_vm12 = vcmask 519168   ;;  %vm1572_vm13 = vcmask 1043968  }
  0x47   : > { %1029 = vperm.xlu1 %6380, %v1026_v45   ;;  %v1578_v11 = vld [vmem:[%s7592_s1] sm:$0xf]  ;;  %s7419_s10 = scalar_lea.vmem [#allocation5], %s5577_s9  ;;  %s5744_s8 = sshll.u32 %s6525_s16, 3 }
  0x48   : > { %1582 = vperm.xlu0 %6379, %v1579_v18   ;;  %s5445_s9 = sshll.u32 %s7419_s10, 4  ;;  %s5427_s21 = scalar_lea.sflag [#allocation4], %s6668_s5  ;;  %s5446_s9 = int_to_ptr.vmem [resolvable:$true] %s5445_s9 }
  0x49   : > { %s6441_s25 = scalar_lea.vmem %s5446_s9, 256 }
  0x4a   : > { %p6442_p8 = scmp.ne.s32.totalorder %s5446_s9, %s6441_s25 }
  0x4b   : > { %1335 = vperm.xlu1 %6380, %v1332_v46  }
  0x4c   : > { %1900 = vperm.xlu0 %6379, %v1897_v19   ;;  %p6443_p0 = pnand %p6442_p8, %p6635_p9 }
  0x4e   : > { %p6444_p2 = pneg %p6443_p0 }
  0x4f   : > { %1674 = vperm.xlu1 %6380, %v1671_v47  }
  0x50   : > { %2222 = vperm.xlu0 %6379, %v2219_v20   ;;  %v947_v20 = vsel %vm300_vm2, %v946_v12, %v945_v13  ;;  %v1670_v12 = vld [vmem:[%s7592_s1 + $0x4] sm:$0xf] }
  0x53   : > { %1980 = vperm.xlu1 %6380, %v1977_v48  }
  0x54   : > { %2540 = vperm.xlu0 %6379, %v2537_v21  }
  0x57   : > { %2314 = vperm.xlu1 %6380, %v2311_v49   ;;  %v1251_v49 = vld [vmem:[%s7592_s1 + $0x8] sm:$0xf] }
  0x58   : > { %2866 = vperm.xlu0 %6379, %v2863_v22  }
  0x5b   : > { %2620 = vperm.xlu1 %6380, %v2617_v50   ;;  %v1331_v50 = vld [vmem:[%s7592_s1 + $0xc] sm:$0xf] }
  0x5c   : > { %3184 = vperm.xlu0 %6379, %v3181_v23  }
  0x5f   : > { %2958 = vperm.xlu1 %6380, %v2955_v51   ;;  %v1575_v51 = vld [vmem:[%s6672_s20 + $0xa] sm:$0x1] }
  0x60   : > { %3506 = vperm.xlu0 %6379, %v3503_v24  }
  0x63   : > { %3264 = vperm.xlu1 %6380, %v3261_v52   ;;  %v1576_v52 = vld [vmem:[%s6672_s20 + $0x12] sm:$0x1] }
  0x64   : > { %3824 = vperm.xlu0 %6379, %v3821_v25  }
  0x67   : > { %3598 = vperm.xlu1 %6380, %v3595_v53   ;;  %v1589_v53 = vrot.slane %v1575_v51, 7 }
  0x68   : > { %4150 = vperm.xlu0 %6379, %v4147_v26   ;;  %v949_v26 = vsel %vm303_vm3, %v948_v17, %v947_v20 }
  0x6b   : > { %3904 = vperm.xlu1 %6380, %v3901_v54   ;;  %v1574_v54 = vld [vmem:[%s6672_s20 + $0x2] sm:$0x1] }
  0x6c   : > { %4468 = vperm.xlu0 %6379, %v4465_v27  }
  0x6f   : > { %4242 = vperm.xlu1 %6380, %v4239_v55   ;;  %v1577_v55 = vld [vmem:[%s6672_s20 + $0x1a] sm:$0x1] }
  0x70   : > { %4790 = vperm.xlu0 %6379, %v4787_v28  }
  0x73   : > { %4548 = vperm.xlu1 %6380, %v4545_v56   ;;  %v1591_v56 = vrot.slane %v1576_v52, 6 }
  0x74   : > { %5108 = vperm.xlu0 %6379, %v5105_v30   ;;  %v1025_v30 = vld [vmem:[%s7592_s1 + $0x4] sm:$0xf] }
  0x77   : > { %4882 = vperm.xlu1 %6380, %v4879_v57   ;;  %v1590_v57 = vsel %vm297_vm1, %v1589_v53, %v1574_v54 }
  0x7b   : > { %5188 = vperm.xlu1 %6380, %v5185_v58  }
  0xb2   : > { %v290_v59 = vpop.permute.xlu0 %289 }
  0xb7   : > { %v387_v60 = vpop.permute.xlu0 %386 }
  0xba   : > { %v614_v10 = vpop.permute.xlu1 %613 }
  0xbb   : > { %v938_v38 = vpop.permute.xlu0 %937 }
  0xbe   : > { %v694_v21 = vpop.permute.xlu1 %693 }
  0xc2   : > { %v1030_v40 = vpop.permute.xlu1 %1029 }
  0xfb   : > { %v378_v61 = vpop.f32.mrf.mxu0  ;;  %v458_v62 = vpop.f32.mrf.mxu1 }
  0xfc   : > { %v379_v63 = vadd.f32 %v378_v61, %v290_v59  ;;  %v459_v1 = vadd.f32 %v458_v62, %v387_v60  ;;  %v1593_v61 = vrot.slane %v1577_v55, 5 }
  0xfd   : > { %v5912_v2 = vpop.f32.mrf.mxu0  ;;  %v5917_v3 = vpop.f32.mrf.mxu1 }
  0xfe   : > { %5923 = vmatmul.mubr.msk.f32.vlgmr.msra.gmra.mxu0 %vm462_vm10, %v459_v1  ;;  %5930 = vmatmul.mubr.msk.f32.vlgmr.msra.gmra.mxu1 %vm462_vm10, %v379_v63  ;;  %v1592_v1 = vsel %vm300_vm2, %v1591_v56, %v1590_v57  ;;  %v1256_v2 = vpop.permute.xlu0 %1255  ;;  %v1336_v3 = vpop.permute.xlu1 %1335 }
  0xff   : > { %5933 = vmatpush3.msk.msra.mxu0 %vm309_vm4, %v6700_v14  ;;  %5938 = vmatpush3.msk.msra.mxu1 %vm309_vm4, %v6700_v14  ;;  %v1594_v8 = vsel %vm303_vm3, %v1593_v61, %v1592_v1 }
 0x100   : > { %5934 = vmatprep.mubr.msk.f32.mxu0 %vm6544_vm0, %v6543_v0  ;;  %5939 = vmatprep.mubr.msk.f32.mxu1 %vm6544_vm0, %v6543_v0 }
 0x101   : > { %5942 = vmatprep.subr.mxu0 %v6543_v0  ;;  %5949 = vmatprep.subr.mxu1 %v6543_v0 }
 0x102   : > { %5935 = vmatmul.mubr.msk.f32.vlgmr.msra.gmra.mxu0 %vm305_vm5, %v609_v4  ;;  %5940 = vmatmul.mubr.msk.f32.vlgmr.msra.gmra.mxu1 %vm305_vm5, %v689_v5  ;;  %v1675_v20 = vpop.permute.xlu1 %1674 }
 0x103   : > { %5943 = vmatpush3.msk.msra.mxu0 %vm6766_vm7, %v6546_v37  ;;  %5950 = vmatpush3.msk.msra.mxu1 %vm6759_vm6, %v6546_v37 }
 0x104   : > { %5944 = vmatprep.subr.mxu0 %v6543_v0  ;;  %5951 = vmatprep.subr.mxu1 %v6543_v0 }
 0x105   : > { %5945 = vmatpush3.msk.msra.mxu0 %vm6775_vm8, %v6546_v37  ;;  %5952 = vmatpush3.msk.msra.mxu1 %vm6779_vm9, %v6546_v37 }
 0x106   : > { %5946 = vmatprep.mubr.msk.f32.mxu0 %vm6544_vm0, %v6543_v0  ;;  %5953 = vmatprep.mubr.msk.f32.mxu1 %vm6544_vm0, %v6543_v0 }
 0x107   : > { %5956 = vmatprep.subr.mxu0 %v6543_v0  ;;  %5961 = vmatprep.subr.mxu1 %v6543_v0 }
 0x1be   : > { %v532_v14 = vpop.f32.mrf.mxu0  ;;  %v605_v15 = vpop.f32.mrf.mxu1 }
 0x1bf   : > { %v6884_v16 = vadd.f32 %v605_v15, %v532_v14 }
 0x1c0   : > { %v5924_v18 = vpop.f32.mrf.mxu0  ;;  %v5931_v19 = vpop.f32.mrf.mxu1 }
 0x1c1   : > { %v1583_v19 = vpop.permute.xlu0 %1582 }
 0x1c2   : > { %v685_v22 = vpop.f32.mrf.mxu0  ;;  %v765_v23 = vpop.f32.mrf.mxu1 }
 0x1c3   : > { %v686_v24 = vadd.f32 %v685_v22, %v614_v10  ;;  %v766_v25 = vadd.f32 %v765_v23, %v694_v21 }
 0x1c4   : > { %v5936_v27 = vpop.f32.mrf.mxu0  ;;  %v5941_v28 = vpop.f32.mrf.mxu1 }
 0x1c5   : > { %5947 = vmatmul.mubr.msk.f32.vlgmr.msra.gmra.mxu0 %vm462_vm10, %v766_v25  ;;  %5954 = vmatmul.mubr.msk.f32.vlgmr.msra.gmra.mxu1 %vm462_vm10, %v686_v24  ;;  %v1896_v27 = vld [vmem:[%s7592_s1 + $0x8] sm:$0xf]  ;;  %v1976_v28 = vld [vmem:[%s7592_s1 + $0xc] sm:$0xf] }
 0x1c6   : > { %5957 = vmatpush3.msk.msra.mxu0 %vm309_vm4, %v949_v26  ;;  %5962 = vmatpush3.msk.msra.mxu1 %vm309_vm4, %v949_v26 }
 0x1c7   : > { %5958 = vmatprep.mubr.msk.f32.mxu0 %vm6544_vm0, %v6543_v0  ;;  %5963 = vmatprep.mubr.msk.f32.mxu1 %vm6544_vm0, %v6543_v0 }
 0x1c8   : > { %5966 = vmatprep.subr.mxu0 %v6543_v0  ;;  %5973 = vmatprep.subr.mxu1 %v6543_v0 }
 0x1c9   : > { %5959 = vmatmul.mubr.msk.f32.vlgmr.msra.gmra.mxu0 %vm305_vm5, %v933_v29  ;;  %5964 = vmatmul.mubr.msk.f32.vlgmr.msra.gmra.mxu1 %vm305_vm5, %v1025_v30  ;;  %v2215_v29 = vld [vmem:[%s6672_s20 + $0xb] sm:$0x1]  ;;  %v2216_v30 = vld [vmem:[%s6672_s20 + $0x13] sm:$0x1] }
 0x1ca   : > { %5967 = vmatpush3.msk.msra.mxu0 %vm6766_vm7, %v6546_v37  ;;  %5974 = vmatpush3.msk.msra.mxu1 %vm6759_vm6, %v6546_v37 }
 0x1cb   : > { %5968 = vmatprep.subr.mxu0 %v6543_v0  ;;  %5975 = vmatprep.subr.mxu1 %v6543_v0 }
 0x1cc   : > { %5969 = vmatpush3.msk.msra.mxu0 %vm6775_vm8, %v6546_v37  ;;  %5976 = vmatpush3.msk.msra.mxu1 %vm6779_vm9, %v6546_v37 }
 0x1cd   : > { %5970 = vmatprep.mubr.msk.f32.mxu0 %vm6544_vm0, %v6543_v0  ;;  %5977 = vmatprep.mubr.msk.f32.mxu1 %vm6544_vm0, %v6543_v0 }
 0x1ce   : > { %5980 = vmatprep.subr.mxu0 %v6543_v0  ;;  %5985 = vmatprep.subr.mxu1 %v6543_v0 }
 0x285   : > { %v838_v31 = vpop.f32.mrf.mxu0  ;;  %v911_v32 = vpop.f32.mrf.mxu1 }
 0x286   : > { %v6926_v33 = vadd.f32 %v911_v32, %v838_v31  ;;  %v2229_v31 = vrot.slane %v2215_v29, 7  ;;  %v2214_v32 = vld [vmem:[%s6672_s20 + $0x3] sm:$0x1] }
 0x287   : > { %v5948_v34 = vpop.f32.mrf.mxu0  ;;  %v5955_v35 = vpop.f32.mrf.mxu1 }
 0x288   : > { %v2217_v34 = vld [vmem:[%s6672_s20 + $0x1b] sm:$0x1]  ;;  %v2231_v35 = vrot.slane %v2216_v30, 6 }
 0x289   : > { %v1021_v43 = vpop.f32.mrf.mxu0  ;;  %v1101_v44 = vpop.f32.mrf.mxu1 }
 0x28a   : > { %v1022_v45 = vadd.f32 %v1021_v43, %v938_v38  ;;  %v1102_v46 = vadd.f32 %v1101_v44, %v1030_v40  ;;  %v2230_v38 = vsel %vm297_vm1, %v2229_v31, %v2214_v32 }
 0x28b   : > { %v5960_v47 = vpop.f32.mrf.mxu0  ;;  %v5965_v48 = vpop.f32.mrf.mxu1 }
 0x28c   : > { %5971 = vmatmul.mubr.msk.f32.vlgmr.msra.gmra.mxu0 %vm462_vm10, %v1102_v46  ;;  %5978 = vmatmul.mubr.msk.f32.vlgmr.msra.gmra.mxu1 %vm462_vm10, %v1022_v45  ;;  %v2233_v45 = vrot.slane %v2217_v34, 5  ;;  %v2232_v48 = vsel %vm300_vm2, %v2231_v35, %v2230_v38 }
 0x28d   : > { %5981 = vmatpush3.msk.msra.mxu0 %vm309_vm4, %v949_v26  ;;  %5986 = vmatpush3.msk.msra.mxu1 %vm309_vm4, %v949_v26 }
 0x28e   : > { %5982 = vmatprep.mubr.msk.f32.mxu0 %vm6544_vm0, %v6543_v0  ;;  %5987 = vmatprep.mubr.msk.f32.mxu1 %vm6544_vm0, %v6543_v0  ;;  %v2234_v55 = vsel %vm303_vm3, %v2233_v45, %v2232_v48  ;;  %v2954_v45 = vld [vmem:[%s7592_s1 + $0x4] sm:$0xf] }
 0x28f   : > { %5990 = vmatprep.subr.mxu0 %v6543_v0  ;;  %5997 = vmatprep.subr.mxu1 %v6543_v0 }
 0x290   : > { %5983 = vmatmul.mubr.msk.f32.vlgmr.msra.gmra.mxu0 %vm305_vm5, %v1251_v49  ;;  %5988 = vmatmul.mubr.msk.f32.vlgmr.msra.gmra.mxu1 %vm305_vm5, %v1331_v50  ;;  %v1901_v49 = vpop.permute.xlu0 %1900  ;;  %v1981_v50 = vpop.permute.xlu1 %1980 }
 0x291   : > { %5991 = vmatpush3.msk.msra.mxu0 %vm6766_vm7, %v6546_v37  ;;  %5998 = vmatpush3.msk.msra.mxu1 %vm6759_vm6, %v6546_v37 }
 0x292   : > { %5992 = vmatprep.subr.mxu0 %v6543_v0  ;;  %5999 = vmatprep.subr.mxu1 %v6543_v0 }
 0x293   : > { %5993 = vmatpush3.msk.msra.mxu0 %vm6775_vm8, %v6546_v37  ;;  %6000 = vmatpush3.msk.msra.mxu1 %vm6779_vm9, %v6546_v37 }
 0x294   : > { %5994 = vmatprep.mubr.msk.f32.mxu0 %vm6544_vm0, %v6543_v0  ;;  %6001 = vmatprep.mubr.msk.f32.mxu1 %vm6544_vm0, %v6543_v0 }
 0x295   : > { %6004 = vmatprep.subr.mxu0 %v6543_v0  ;;  %6009 = vmatprep.subr.mxu1 %v6543_v0 }
 0x34c   : > { %v1174_v58 = vpop.f32.mrf.mxu0  ;;  %v1247_v59 = vpop.f32.mrf.mxu1 }
 0x34d   : > { %v6971_v60 = vadd.f32 %v1247_v59, %v1174_v58  ;;  %v2218_v58 = vld [vmem:[%s7592_s1] sm:$0xf]  ;;  %v2310_v59 = vld [vmem:[%s7592_s1 + $0x4] sm:$0xf] }
 0x34e   : > { %v5972_v62 = vpop.f32.mrf.mxu0  ;;  %v5979_v63 = vpop.f32.mrf.mxu1 }
 0x350   : > { %v1327_v4 = vpop.f32.mrf.mxu0  ;;  %v1407_v5 = vpop.f32.mrf.mxu1 }
 0x351   : > { %v1328_v6 = vadd.f32 %v1327_v4, %v1256_v2  ;;  %v1408_v7 = vadd.f32 %v1407_v5, %v1336_v3  ;;  %v2223_v3 = vpop.permute.xlu0 %2222  ;;  %v2315_v4 = vpop.permute.xlu1 %2314 }
 0x352   : > { %v5984_v9 = vpop.f32.mrf.mxu0  ;;  %v5989_v10 = vpop.f32.mrf.mxu1 }
 0x353   : > { %5995 = vmatmul.mubr.msk.f32.vlgmr.msra.gmra.mxu0 %vm462_vm10, %v1408_v7  ;;  %6002 = vmatmul.mubr.msk.f32.vlgmr.msra.gmra.mxu1 %vm462_vm10, %v1328_v6 }
 0x354   : > { %6005 = vmatpush3.msk.msra.mxu0 %vm309_vm4, %v1594_v8  ;;  %6010 = vmatpush3.msk.msra.mxu1 %vm309_vm4, %v1594_v8 }
 0x355   : > { %6006 = vmatprep.mubr.msk.f32.mxu0 %vm6544_vm0, %v6543_v0  ;;  %6011 = vmatprep.mubr.msk.f32.mxu1 %vm6544_vm0, %v6543_v0  ;;  %v2621_v29 = vpop.permute.xlu1 %2620 }
 0x356   : > { %6014 = vmatprep.subr.mxu0 %v6543_v0  ;;  %6021 = vmatprep.subr.mxu1 %v6543_v0 }
 0x357   : > { %6007 = vmatmul.mubr.msk.f32.vlgmr.msra.gmra.mxu0 %vm305_vm5, %v1578_v11  ;;  %6012 = vmatmul.mubr.msk.f32.vlgmr.msra.gmra.mxu1 %vm305_vm5, %v1670_v12  ;;  %v2536_v11 = vld [vmem:[%s7592_s1 + $0x8] sm:$0xf]  ;;  %v2616_v12 = vld [vmem:[%s7592_s1 + $0xc] sm:$0xf] }
 0x358   : > { %6015 = vmatpush3.msk.msra.mxu0 %vm6766_vm7, %v6546_v37  ;;  %6022 = vmatpush3.msk.msra.mxu1 %vm6759_vm6, %v6546_v37 }
 0x359   : > { %6016 = vmatprep.subr.mxu0 %v6543_v0  ;;  %6023 = vmatprep.subr.mxu1 %v6543_v0 }
 0x35a   : > { %6017 = vmatpush3.msk.msra.mxu0 %vm6775_vm8, %v6546_v37  ;;  %6024 = vmatpush3.msk.msra.mxu1 %vm6779_vm9, %v6546_v37 }
 0x35b   : > { %6018 = vmatprep.mubr.msk.f32.mxu0 %vm6544_vm0, %v6543_v0  ;;  %6025 = vmatprep.mubr.msk.f32.mxu1 %vm6544_vm0, %v6543_v0 }
 0x35c   : > { %6028 = vmatprep.subr.mxu0 %v6543_v0  ;;  %6033 = vmatprep.subr.mxu1 %v6543_v0 }
 0x413   : > { %v1480_v13 = vpop.f32.mrf.mxu0  ;;  %v1553_v14 = vpop.f32.mrf.mxu1 }
 0x414   : > { %v1554_v15 = vadd.f32 %v1553_v14, %v1480_v13  ;;  %v2859_v13 = vld [vmem:[%s6672_s20 + $0xc] sm:$0x1]  ;;  %v2860_v14 = vld [vmem:[%s6672_s20 + $0x14] sm:$0x1] }
 0x415   : > { %v5996_v17 = vpop.f32.mrf.mxu0  ;;  %v6003_v18 = vpop.f32.mrf.mxu1 }
 0x416   : > { %1558 = vrot.lane.b32.xlu0 %v1554_v15, %s6547_s27  ;;  %v2873_v15 = vrot.slane %v2859_v13, 7  ;;  %v2858_v17 = vld [vmem:[%s6672_s20 + $0x4] sm:$0x1]  ;;  %v2861_v18 = vld [vmem:[%s6672_s20 + $0x1c] sm:$0x1] }
 0x417   : > { %v1666_v21 = vpop.f32.mrf.mxu0  ;;  %v1746_v22 = vpop.f32.mrf.mxu1 }
 0x418   : > { %v1667_v23 = vadd.f32 %v1666_v21, %v1583_v19  ;;  %v1747_v24 = vadd.f32 %v1746_v22, %v1675_v20  ;;  %v2875_v19 = vrot.slane %v2860_v14, 6  ;;  %v2874_v20 = vsel %vm297_vm1, %v2873_v15, %v2858_v17 }
 0x419   : > { %v6008_v25 = vpop.f32.mrf.mxu0  ;;  %v6013_v26 = vpop.f32.mrf.mxu1 }
 0x41a   : > { %6019 = vmatmul.mubr.msk.f32.vlgmr.msra.gmra.mxu0 %vm462_vm10, %v1747_v24  ;;  %6026 = vmatmul.mubr.msk.f32.vlgmr.msra.gmra.mxu1 %vm462_vm10, %v1667_v23  ;;  %v2877_v24 = vrot.slane %v2861_v18, 5 }
 0x41b   : > { %6029 = vmatpush3.msk.msra.mxu0 %vm309_vm4, %v1594_v8  ;;  %6034 = vmatpush3.msk.msra.mxu1 %vm309_vm4, %v1594_v8 }
 0x41c   : > { %6030 = vmatprep.mubr.msk.f32.mxu0 %vm6544_vm0, %v6543_v0  ;;  %6035 = vmatprep.mubr.msk.f32.mxu1 %vm6544_vm0, %v6543_v0 }
 0x41d   : > { %6038 = vmatprep.subr.mxu0 %v6543_v0  ;;  %6045 = vmatprep.subr.mxu1 %v6543_v0 }
 0x41e   : > { %6031 = vmatmul.mubr.msk.f32.vlgmr.msra.gmra.mxu0 %vm305_vm5, %v1896_v27  ;;  %6036 = vmatmul.mubr.msk.f32.vlgmr.msra.gmra.mxu1 %vm305_vm5, %v1976_v28  ;;  %v2876_v27 = vsel %vm300_vm2, %v2875_v19, %v2874_v20  ;;  %v2541_v28 = vpop.permute.xlu0 %2540 }
 0x41f   : > { %6039 = vmatpush3.msk.msra.mxu0 %vm6766_vm7, %v6546_v37  ;;  %6046 = vmatpush3.msk.msra.mxu1 %vm6759_vm6, %v6546_v37  ;;  %v2878_v35 = vsel %vm303_vm3, %v2877_v24, %v2876_v27 }
 0x420   : > { %6040 = vmatprep.subr.mxu0 %v6543_v0  ;;  %6047 = vmatprep.subr.mxu1 %v6543_v0 }
 0x421   : > { %6041 = vmatpush3.msk.msra.mxu0 %vm6775_vm8, %v6546_v37  ;;  %6048 = vmatpush3.msk.msra.mxu1 %vm6779_vm9, %v6546_v37 }
 0x422   : > { %6042 = vmatprep.mubr.msk.f32.mxu0 %vm6544_vm0, %v6543_v0  ;;  %6049 = vmatprep.mubr.msk.f32.mxu1 %vm6544_vm0, %v6543_v0 }
 0x423   : > { %6052 = vmatprep.subr.mxu0 %v6543_v0  ;;  %6057 = vmatprep.subr.mxu1 %v6543_v0 }
 0x4da   : > { %v1819_v40 = vpop.f32.mrf.mxu0  ;;  %v1892_v43 = vpop.f32.mrf.mxu1 }
 0x4db   : > { %v7057_v44 = vadd.f32 %v1892_v43, %v1819_v40  ;;  %v2862_v43 = vld [vmem:[%s7592_s1] sm:$0xf] }
 0x4dc   : > { %v6020_v46 = vpop.f32.mrf.mxu0  ;;  %v6027_v47 = vpop.f32.mrf.mxu1 }
 0x4de   : > { %v1972_v51 = vpop.f32.mrf.mxu0  ;;  %v2052_v52 = vpop.f32.mrf.mxu1 }
 0x4df   : > { %v1973_v53 = vadd.f32 %v1972_v51, %v1901_v49  ;;  %v2053_v54 = vadd.f32 %v2052_v52, %v1981_v50  ;;  %v2867_v51 = vpop.permute.xlu0 %2866  ;;  %v2959_v52 = vpop.permute.xlu1 %2958 }
 0x4e0   : > { %v6032_v56 = vpop.f32.mrf.mxu0  ;;  %v6037_v57 = vpop.f32.mrf.mxu1 }
 0x4e1   : > { %6043 = vmatmul.mubr.msk.f32.vlgmr.msra.gmra.mxu0 %vm462_vm10, %v2053_v54  ;;  %6050 = vmatmul.mubr.msk.f32.vlgmr.msra.gmra.mxu1 %vm462_vm10, %v1973_v53 }
 0x4e2   : > { %6053 = vmatpush3.msk.msra.mxu0 %vm309_vm4, %v2234_v55  ;;  %6058 = vmatpush3.msk.msra.mxu1 %vm309_vm4, %v2234_v55 }
 0x4e3   : > { %6054 = vmatprep.mubr.msk.f32.mxu0 %vm6544_vm0, %v6543_v0  ;;  %6059 = vmatprep.mubr.msk.f32.mxu1 %vm6544_vm0, %v6543_v0  ;;  %v3185_v14 = vpop.permute.xlu0 %3184  ;;  %v3265_v15 = vpop.permute.xlu1 %3264 }
 0x4e4   : > { %6062 = vmatprep.subr.mxu0 %v6543_v0  ;;  %6069 = vmatprep.subr.mxu1 %v6543_v0 }
 0x4e5   : > { %6055 = vmatmul.mubr.msk.f32.vlgmr.msra.gmra.mxu0 %vm305_vm5, %v2218_v58  ;;  %6060 = vmatmul.mubr.msk.f32.vlgmr.msra.gmra.mxu1 %vm305_vm5, %v2310_v59  ;;  %v3180_v59 = vld [vmem:[%s7592_s1 + $0x8] sm:$0xf] }
 0x4e6   : > { %6063 = vmatpush3.msk.msra.mxu0 %vm6766_vm7, %v6546_v37  ;;  %6070 = vmatpush3.msk.msra.mxu1 %vm6759_vm6, %v6546_v37 }
 0x4e7   : > { %6064 = vmatprep.subr.mxu0 %v6543_v0  ;;  %6071 = vmatprep.subr.mxu1 %v6543_v0 }
 0x4e8   : > { %6065 = vmatpush3.msk.msra.mxu0 %vm6775_vm8, %v6546_v37  ;;  %6072 = vmatpush3.msk.msra.mxu1 %vm6779_vm9, %v6546_v37 }
 0x4e9   : > { %6066 = vmatprep.mubr.msk.f32.mxu0 %vm6544_vm0, %v6543_v0  ;;  %6073 = vmatprep.mubr.msk.f32.mxu1 %vm6544_vm0, %v6543_v0 }
 0x4ea   : > { %6076 = vmatprep.subr.mxu0 %v6543_v0  ;;  %6081 = vmatprep.subr.mxu1 %v6543_v0 }
 0x5a1   : > { %v2125_v61 = vpop.f32.mrf.mxu0  ;;  %v2198_v62 = vpop.f32.mrf.mxu1 }
 0x5a2   : > { %v7099_v63 = vadd.f32 %v2198_v62, %v2125_v61  ;;  %v3260_v61 = vld [vmem:[%s7592_s1 + $0xc] sm:$0xf] }
 0x5a3   : > { %v6044_v1 = vpop.f32.mrf.mxu0  ;;  %v6051_v2 = vpop.f32.mrf.mxu1  ;;  %v3499_v62 = vld [vmem:[%s6672_s20 + $0xd] sm:$0x1] }
 0x5a4   : > { %v3500_v1 = vld [vmem:[%s6672_s20 + $0x15] sm:$0x1]  ;;  %v3513_v2 = vrot.slane %v3499_v62, 7 }
 0x5a5   : > { %v2306_v5 = vpop.f32.mrf.mxu0  ;;  %v2386_v6 = vpop.f32.mrf.mxu1 }
 0x5a6   : > { %v2307_v7 = vadd.f32 %v2306_v5, %v2223_v3  ;;  %v2387_v8 = vadd.f32 %v2386_v6, %v2315_v4  ;;  %v3498_v3 = vld [vmem:[%s6672_s20 + $0x5] sm:$0x1]  ;;  %v3501_v4 = vld [vmem:[%s6672_s20 + $0x1d] sm:$0x1]  ;;  %v3515_v5 = vrot.slane %v3500_v1, 6 }
 0x5a7   : > { %v6056_v9 = vpop.f32.mrf.mxu0  ;;  %v6061_v10 = vpop.f32.mrf.mxu1  ;;  %v3514_v6 = vsel %vm297_vm1, %v3513_v2, %v3498_v3 }
 0x5a8   : > { %6067 = vmatmul.mubr.msk.f32.vlgmr.msra.gmra.mxu0 %vm462_vm10, %v2387_v8  ;;  %6074 = vmatmul.mubr.msk.f32.vlgmr.msra.gmra.mxu1 %vm462_vm10, %v2307_v7  ;;  %v3517_v10 = vrot.slane %v3501_v4, 5  ;;  %v3516_v13 = vsel %vm300_vm2, %v3515_v5, %v3514_v6 }
 0x5a9   : > { %6077 = vmatpush3.msk.msra.mxu0 %vm309_vm4, %v2234_v55  ;;  %6082 = vmatpush3.msk.msra.mxu1 %vm309_vm4, %v2234_v55 }
 0x5aa   : > { %6078 = vmatprep.mubr.msk.f32.mxu0 %vm6544_vm0, %v6543_v0  ;;  %6083 = vmatprep.mubr.msk.f32.mxu1 %vm6544_vm0, %v6543_v0 }
 0x5ab   : > { %6086 = vmatprep.subr.mxu0 %v6543_v0  ;;  %6093 = vmatprep.subr.mxu1 %v6543_v0 }
 0x5ac   : > { %6079 = vmatmul.mubr.msk.f32.vlgmr.msra.gmra.mxu0 %vm305_vm5, %v2536_v11  ;;  %6084 = vmatmul.mubr.msk.f32.vlgmr.msra.gmra.mxu1 %vm305_vm5, %v2616_v12 }
 0x5ad   : > { %6087 = vmatpush3.msk.msra.mxu0 %vm6766_vm7, %v6546_v37  ;;  %6094 = vmatpush3.msk.msra.mxu1 %vm6759_vm6, %v6546_v37 }
 0x5ae   : > { %6088 = vmatprep.subr.mxu0 %v6543_v0  ;;  %6095 = vmatprep.subr.mxu1 %v6543_v0 }
 0x5af   : > { %6089 = vmatpush3.msk.msra.mxu0 %vm6775_vm8, %v6546_v37  ;;  %6096 = vmatpush3.msk.msra.mxu1 %vm6779_vm9, %v6546_v37 }
 0x5b0   : > { %6090 = vmatprep.mubr.msk.f32.mxu0 %vm6544_vm0, %v6543_v0  ;;  %6097 = vmatprep.mubr.msk.f32.mxu1 %vm6544_vm0, %v6543_v0 }
 0x5b1   : > { %6100 = vmatprep.subr.mxu0 %v6543_v0  ;;  %6105 = vmatprep.subr.mxu1 %v6543_v0 }
 0x668   : > { %v2459_v21 = vpop.f32.mrf.mxu0  ;;  %v2532_v22 = vpop.f32.mrf.mxu1 }
 0x669   : > { %v7144_v23 = vadd.f32 %v2532_v22, %v2459_v21  ;;  %v3518_v21 = vsel %vm303_vm3, %v3517_v10, %v3516_v13  ;;  %v4238_v13 = vld [vmem:[%s7592_s1 + $0x4] sm:$0xf] }
 0x66a   : > { %v6068_v25 = vpop.f32.mrf.mxu0  ;;  %v6075_v26 = vpop.f32.mrf.mxu1 }
 0x66b   : > { %v3502_v25 = vld [vmem:[%s7592_s1] sm:$0xf]  ;;  %v3594_v26 = vld [vmem:[%s7592_s1 + $0x4] sm:$0xf] }
 0x66c   : > { %v2612_v30 = vpop.f32.mrf.mxu0  ;;  %v2692_v31 = vpop.f32.mrf.mxu1 }
 0x66d   : > { %v2613_v32 = vadd.f32 %v2612_v30, %v2541_v28  ;;  %v2693_v34 = vadd.f32 %v2692_v31, %v2621_v29 }
 0x66e   : > { %v6080_v38 = vpop.f32.mrf.mxu0  ;;  %v6085_v40 = vpop.f32.mrf.mxu1 }
 0x66f   : > { %6091 = vmatmul.mubr.msk.f32.vlgmr.msra.gmra.mxu0 %vm462_vm10, %v2693_v34  ;;  %6098 = vmatmul.mubr.msk.f32.vlgmr.msra.gmra.mxu1 %vm462_vm10, %v2613_v32  ;;  %v3507_v32 = vpop.permute.xlu0 %3506  ;;  %v3599_v34 = vpop.permute.xlu1 %3598 }
 0x670   : > { %6101 = vmatpush3.msk.msra.mxu0 %vm309_vm4, %v2878_v35  ;;  %6106 = vmatpush3.msk.msra.mxu1 %vm309_vm4, %v2878_v35 }
 0x671   : > { %6102 = vmatprep.mubr.msk.f32.mxu0 %vm6544_vm0, %v6543_v0  ;;  %6107 = vmatprep.mubr.msk.f32.mxu1 %vm6544_vm0, %v6543_v0 }
 0x672   : > { %6110 = vmatprep.subr.mxu0 %v6543_v0  ;;  %6117 = vmatprep.subr.mxu1 %v6543_v0 }
 0x673   : > { %6103 = vmatmul.mubr.msk.f32.vlgmr.msra.gmra.mxu0 %vm305_vm5, %v2862_v43  ;;  %6108 = vmatmul.mubr.msk.f32.vlgmr.msra.gmra.mxu1 %vm305_vm5, %v2954_v45  ;;  %v3825_v2 = vpop.permute.xlu0 %3824  ;;  %v3905_v3 = vpop.permute.xlu1 %3904 }
 0x674   : > { %6111 = vmatpush3.msk.msra.mxu0 %vm6766_vm7, %v6546_v37  ;;  %6118 = vmatpush3.msk.msra.mxu1 %vm6759_vm6, %v6546_v37 }
 0x675   : > { %6112 = vmatprep.subr.mxu0 %v6543_v0  ;;  %6119 = vmatprep.subr.mxu1 %v6543_v0 }
 0x676   : > { %6113 = vmatpush3.msk.msra.mxu0 %vm6775_vm8, %v6546_v37  ;;  %6120 = vmatpush3.msk.msra.mxu1 %vm6779_vm9, %v6546_v37 }
 0x677   : > { %6114 = vmatprep.mubr.msk.f32.mxu0 %vm6544_vm0, %v6543_v0  ;;  %6121 = vmatprep.mubr.msk.f32.mxu1 %vm6544_vm0, %v6543_v0 }
 0x678   : > { %6124 = vmatprep.subr.mxu0 %v6543_v0  ;;  %6129 = vmatprep.subr.mxu1 %v6543_v0 }
 0x72f   : > { %v2765_v46 = vpop.f32.mrf.mxu0  ;;  %v2838_v47 = vpop.f32.mrf.mxu1 }
 0x730   : > { %v2839_v48 = vadd.f32 %v2838_v47, %v2765_v46  ;;  %v3820_v47 = vld [vmem:[%s7592_s1 + $0x8] sm:$0xf] }
 0x731   : > { %v6092_v49 = vpop.f32.mrf.mxu0  ;;  %v6099_v50 = vpop.f32.mrf.mxu1 }
 0x732   : > { %2843 = vrot.lane.b32.xlu1 %v2839_v48, %s6547_s27  ;;  %v3900_v48 = vld [vmem:[%s7592_s1 + $0xc] sm:$0xf]  ;;  %v4144_v50 = vld [vmem:[%s6672_s20 + $0x16] sm:$0x1] }
 0x733   : > { %v2950_v53 = vpop.f32.mrf.mxu0  ;;  %v3030_v54 = vpop.f32.mrf.mxu1  ;;  %v4143_v49 = vld [vmem:[%s6672_s20 + $0xe] sm:$0x1] }
 0x734   : > { %v2951_v55 = vadd.f32 %v2950_v53, %v2867_v51  ;;  %v3031_v56 = vadd.f32 %v3030_v54, %v2959_v52  ;;  %v4157_v51 = vrot.slane %v4143_v49, 7  ;;  %v4142_v52 = vld [vmem:[%s6672_s20 + $0x6] sm:$0x1]  ;;  %v4145_v53 = vld [vmem:[%s6672_s20 + $0x1e] sm:$0x1]  ;;  %v4159_v54 = vrot.slane %v4144_v50, 6 }
 0x735   : > { %v6104_v57 = vpop.f32.mrf.mxu0  ;;  %v6109_v58 = vpop.f32.mrf.mxu1 }
 0x736   : > { %6115 = vmatmul.mubr.msk.f32.vlgmr.msra.gmra.mxu0 %vm462_vm10, %v3031_v56  ;;  %6122 = vmatmul.mubr.msk.f32.vlgmr.msra.gmra.mxu1 %vm462_vm10, %v2951_v55  ;;  %v4158_v55 = vsel %vm297_vm1, %v4157_v51, %v4142_v52 }
 0x737   : > { %6125 = vmatpush3.msk.msra.mxu0 %vm309_vm4, %v2878_v35  ;;  %6130 = vmatpush3.msk.msra.mxu1 %vm309_vm4, %v2878_v35  ;;  %v4160_v1 = vsel %vm300_vm2, %v4159_v54, %v4158_v55 }
 0x738   : > { %6126 = vmatprep.mubr.msk.f32.mxu0 %vm6544_vm0, %v6543_v0  ;;  %6131 = vmatprep.mubr.msk.f32.mxu1 %vm6544_vm0, %v6543_v0 }
 0x739   : > { %6134 = vmatprep.subr.mxu0 %v6543_v0  ;;  %6141 = vmatprep.subr.mxu1 %v6543_v0 }
 0x73a   : > { %6127 = vmatmul.mubr.msk.f32.vlgmr.msra.gmra.mxu0 %vm305_vm5, %v3180_v59  ;;  %6132 = vmatmul.mubr.msk.f32.vlgmr.msra.gmra.mxu1 %vm305_vm5, %v3260_v61  ;;  %v4161_v59 = vrot.slane %v4145_v53, 5 }
 0x73b   : > { %6135 = vmatpush3.msk.msra.mxu0 %vm6766_vm7, %v6546_v37  ;;  %6142 = vmatpush3.msk.msra.mxu1 %vm6759_vm6, %v6546_v37 }
 0x73c   : > { %6136 = vmatprep.subr.mxu0 %v6543_v0  ;;  %6143 = vmatprep.subr.mxu1 %v6543_v0 }
 0x73d   : > { %6137 = vmatpush3.msk.msra.mxu0 %vm6775_vm8, %v6546_v37  ;;  %6144 = vmatpush3.msk.msra.mxu1 %vm6779_vm9, %v6546_v37 }
 0x73e   : > { %6138 = vmatprep.mubr.msk.f32.mxu0 %vm6544_vm0, %v6543_v0  ;;  %6145 = vmatprep.mubr.msk.f32.mxu1 %vm6544_vm0, %v6543_v0 }
 0x73f   : > { %6148 = vmatprep.subr.mxu0 %v6543_v0  ;;  %6153 = vmatprep.subr.mxu1 %v6543_v0 }
 0x7f6   : > { %v3103_v7 = vpop.f32.mrf.mxu0  ;;  %v3176_v8 = vpop.f32.mrf.mxu1 }
 0x7f7   : > { %v7230_v9 = vadd.f32 %v3176_v8, %v3103_v7  ;;  %v4162_v8 = vsel %vm303_vm3, %v4161_v59, %v4160_v1 }
 0x7f8   : > { %v6116_v11 = vpop.f32.mrf.mxu0  ;;  %v6123_v12 = vpop.f32.mrf.mxu1 }
 0x7f9   : > { %v4146_v12 = vld [vmem:[%s7592_s1] sm:$0xf] }
 0x7fa   : > { %v3256_v17 = vpop.f32.mrf.mxu0  ;;  %v3336_v18 = vpop.f32.mrf.mxu1 }
 0x7fb   : > { %v3257_v19 = vadd.f32 %v3256_v17, %v3185_v14  ;;  %v3337_v20 = vadd.f32 %v3336_v18, %v3265_v15  ;;  %v4151_v14 = vpop.permute.xlu0 %4150 }
 0x7fc   : > { %v6128_v22 = vpop.f32.mrf.mxu0  ;;  %v6133_v24 = vpop.f32.mrf.mxu1 }
 0x7fd   : > { %6139 = vmatmul.mubr.msk.f32.vlgmr.msra.gmra.mxu0 %vm462_vm10, %v3337_v20  ;;  %6146 = vmatmul.mubr.msk.f32.vlgmr.msra.gmra.mxu1 %vm462_vm10, %v3257_v19 }
 0x7fe   : > { %6149 = vmatpush3.msk.msra.mxu0 %vm309_vm4, %v3518_v21  ;;  %6154 = vmatpush3.msk.msra.mxu1 %vm309_vm4, %v3518_v21 }
 0x7ff   : > { %6150 = vmatprep.mubr.msk.f32.mxu0 %vm6544_vm0, %v6543_v0  ;;  %6155 = vmatprep.mubr.msk.f32.mxu1 %vm6544_vm0, %v6543_v0  ;;  %v7359_v15 = vpop.permute.xlu0 %4468 }
 0x800   : > { %6158 = vmatprep.subr.mxu0 %v6543_v0  ;;  %6165 = vmatprep.subr.mxu1 %v6543_v0 }
 0x801   : > { %6151 = vmatmul.mubr.msk.f32.vlgmr.msra.gmra.mxu0 %vm305_vm5, %v3502_v25  ;;  %6156 = vmatmul.mubr.msk.f32.vlgmr.msra.gmra.mxu1 %vm305_vm5, %v3594_v26 }
 0x802   : > { %6159 = vmatpush3.msk.msra.mxu0 %vm6766_vm7, %v6546_v37  ;;  %6166 = vmatpush3.msk.msra.mxu1 %vm6759_vm6, %v6546_v37 }
 0x803   : > { %6160 = vmatprep.subr.mxu0 %v6543_v0  ;;  %6167 = vmatprep.subr.mxu1 %v6543_v0  ;;  %v7361_v17 = vpop.permute.xlu0 %4790 }
 0x804   : > { %6161 = vmatpush3.msk.msra.mxu0 %vm6775_vm8, %v6546_v37  ;;  %6168 = vmatpush3.msk.msra.mxu1 %vm6779_vm9, %v6546_v37 }
 0x805   : > { %6162 = vmatprep.mubr.msk.f32.mxu0 %vm6544_vm0, %v6543_v0  ;;  %6169 = vmatprep.mubr.msk.f32.mxu1 %vm6544_vm0, %v6543_v0 }
 0x806   : > { %6172 = vmatprep.subr.mxu0 %v6543_v0  ;;  %6177 = vmatprep.subr.mxu1 %v6543_v0 }
 0x807   : > { %v7363_v18 = vpop.permute.xlu0 %5108 }
 0x80b   : > { %v1559_v19 = vpop.permute.xlu0 %1558 }
 0x80c   : > { %v1561_v20 = vsel %vm919_vm11, %v6971_v60, %v1559_v19 }
 0x8bd   : > { %v3409_v27 = vpop.f32.mrf.mxu0  ;;  %v3482_v28 = vpop.f32.mrf.mxu1 }
 0x8be   : > { %v7272_v29 = vadd.f32 %v3482_v28, %v3409_v27 }
 0x8bf   : > { %v6140_v30 = vpop.f32.mrf.mxu0  ;;  %v6147_v31 = vpop.f32.mrf.mxu1 }
 0x8c1   : > { %v3590_v35 = vpop.f32.mrf.mxu0  ;;  %v3670_v38 = vpop.f32.mrf.mxu1 }
 0x8c2   : > { %v3591_v40 = vadd.f32 %v3590_v35, %v3507_v32  ;;  %v3671_v43 = vadd.f32 %v3670_v38, %v3599_v34  ;;  %v4243_v32 = vpop.permute.xlu1 %4242 }
 0x8c3   : > { %v6152_v45 = vpop.f32.mrf.mxu0  ;;  %v6157_v46 = vpop.f32.mrf.mxu1 }
 0x8c4   : > { %6163 = vmatmul.mubr.msk.f32.vlgmr.msra.gmra.mxu0 %vm462_vm10, %v3671_v43  ;;  %6170 = vmatmul.mubr.msk.f32.vlgmr.msra.gmra.mxu1 %vm462_vm10, %v3591_v40  ;;  %v4464_v45 = vld [vmem:[%s7592_s1 + $0x8] sm:$0xf]  ;;  %v4544_v46 = vld [vmem:[%s7592_s1 + $0xc] sm:$0xf] }
 0x8c5   : > { %6173 = vmatpush3.msk.msra.mxu0 %vm309_vm4, %v3518_v21  ;;  %6178 = vmatpush3.msk.msra.mxu1 %vm309_vm4, %v3518_v21  ;;  %v1562_v21 = vsub.f32 0.0, %v1561_v20 }
 0x8c6   : > { %6174 = vmatprep.mubr.msk.f32.mxu0 %vm6544_vm0, %v6543_v0  ;;  %6179 = vmatprep.mubr.msk.f32.mxu1 %vm6544_vm0, %v6543_v0 }
 0x8c7   : > { %6182 = vmatprep.subr.mxu0 %v6543_v0  ;;  %6189 = vmatprep.subr.mxu1 %v6543_v0  ;;  %v1563_v22 = vmul.f32 1.442695, %v1562_v21 }
 0x8c8   : > { %6175 = vmatmul.mubr.msk.f32.vlgmr.msra.gmra.mxu0 %vm305_vm5, %v3820_v47  ;;  %6180 = vmatmul.mubr.msk.f32.vlgmr.msra.gmra.mxu1 %vm305_vm5, %v3900_v48 }
 0x8c9   : > { %6183 = vmatpush3.msk.msra.mxu0 %vm6766_vm7, %v6546_v37  ;;  %6190 = vmatpush3.msk.msra.mxu1 %vm6759_vm6, %v6546_v37  ;;  %6381 = vpow2.f32 %v1563_v22 }
 0x8ca   : > { %6184 = vmatprep.subr.mxu0 %v6543_v0  ;;  %6191 = vmatprep.subr.mxu1 %v6543_v0 }
 0x8cb   : > { %6185 = vmatpush3.msk.msra.mxu0 %vm6775_vm8, %v6546_v37  ;;  %6192 = vmatpush3.msk.msra.mxu1 %vm6779_vm9, %v6546_v37 }
 0x8cc   : > { %6186 = vmatprep.mubr.msk.f32.mxu0 %vm6544_vm0, %v6543_v0  ;;  %6193 = vmatprep.mubr.msk.f32.mxu1 %vm6544_vm0, %v6543_v0 }
 0x8cd   : > { %6196 = vmatprep.subr.mxu0 %v6543_v0  ;;  %6201 = vmatprep.subr.mxu1 %v6543_v0 }
 0x8d6   : > { %v6382_v24 = vpop.eup %6381 }
 0x8d7   : > { %v1565_v25 = vadd.f32 1.0, %v6382_v24 }
 0x8d9   : > { %6383 = vrcp.f32 %v1565_v25 }
 0x8e6   : > { %v6384_v47 = vpop.eup %6383 }
 0x984   : > { %v3743_v56 = vpop.f32.mrf.mxu0  ;;  %v3816_v57 = vpop.f32.mrf.mxu1 }
 0x985   : > { %v7317_v58 = vadd.f32 %v3816_v57, %v3743_v56 }
 0x986   : > { %v6164_v61 = vpop.f32.mrf.mxu0  ;;  %v6171_v62 = vpop.f32.mrf.mxu1 }
 0x988   : > { %v3896_v4 = vpop.f32.mrf.mxu0  ;;  %v3976_v5 = vpop.f32.mrf.mxu1 }
 0x989   : > { %v3897_v6 = vadd.f32 %v3896_v4, %v3825_v2  ;;  %v3977_v7 = vadd.f32 %v3976_v5, %v3905_v3 }
 0x98a   : > { %v6176_v10 = vpop.f32.mrf.mxu0  ;;  %v6181_v11 = vpop.f32.mrf.mxu1 }
 0x98b   : > { %6187 = vmatmul.mubr.msk.f32.vlgmr.msra.gmra.mxu0 %vm462_vm10, %v3977_v7  ;;  %6194 = vmatmul.mubr.msk.f32.vlgmr.msra.gmra.mxu1 %vm462_vm10, %v3897_v6  ;;  %v4783_v10 = vld [vmem:[%s6672_s20 + $0xf] sm:$0x1]  ;;  %v4784_v11 = vld [vmem:[%s6672_s20 + $0x17] sm:$0x1] }
 0x98c   : > { %6197 = vmatpush3.msk.msra.mxu0 %vm309_vm4, %v4162_v8  ;;  %6202 = vmatpush3.msk.msra.mxu1 %vm309_vm4, %v4162_v8  ;;  %v4799_v19 = vrot.slane %v4784_v11, 6 }
 0x98d   : > { %6198 = vmatprep.mubr.msk.f32.mxu0 %vm6544_vm0, %v6543_v0  ;;  %6203 = vmatprep.mubr.msk.f32.mxu1 %vm6544_vm0, %v6543_v0 }
 0x98e   : > { %6206 = vmatprep.subr.mxu0 %v6543_v0  ;;  %6213 = vmatprep.subr.mxu1 %v6543_v0 }
 0x98f   : > { %6199 = vmatmul.mubr.msk.f32.vlgmr.msra.gmra.mxu0 %vm305_vm5, %v4146_v12  ;;  %6204 = vmatmul.mubr.msk.f32.vlgmr.msra.gmra.mxu1 %vm305_vm5, %v4238_v13  ;;  %v4797_v12 = vrot.slane %v4783_v10, 7  ;;  %v4782_v13 = vld [vmem:[%s6672_s20 + $0x7] sm:$0x1] }
 0x990   : > { %6207 = vmatpush3.msk.msra.mxu0 %vm6766_vm7, %v6546_v37  ;;  %6214 = vmatpush3.msk.msra.mxu1 %vm6759_vm6, %v6546_v37 }
 0x991   : > { %6208 = vmatprep.subr.mxu0 %v6543_v0  ;;  %6215 = vmatprep.subr.mxu1 %v6543_v0 }
 0x992   : > { %6209 = vmatpush3.msk.msra.mxu0 %vm6775_vm8, %v6546_v37  ;;  %6216 = vmatpush3.msk.msra.mxu1 %vm6779_vm9, %v6546_v37 }
 0x993   : > { %6210 = vmatprep.mubr.msk.f32.mxu0 %vm6544_vm0, %v6543_v0  ;;  %6217 = vmatprep.mubr.msk.f32.mxu1 %vm6544_vm0, %v6543_v0 }
 0x994   : > { %6220 = vmatprep.subr.mxu0 %v6543_v0  ;;  %6225 = vmatprep.subr.mxu1 %v6543_v0 }
 0xa4b   : > { %v4049_v26 = vpop.f32.mrf.mxu0  ;;  %v4122_v27 = vpop.f32.mrf.mxu1 }
 0xa4c   : > { %v4123_v28 = vadd.f32 %v4122_v27, %v4049_v26 }
 0xa4d   : > { %v6188_v30 = vpop.f32.mrf.mxu0  ;;  %v6195_v31 = vpop.f32.mrf.mxu1 }
 0xa4e   : > { %4127 = vrot.lane.b32.xlu0 %v4123_v28, %s6547_s27  ;;  %v4549_v31 = vpop.permute.xlu1 %4548 }
 0xa4f   : > { %v4234_v34 = vpop.f32.mrf.mxu0  ;;  %v4314_v35 = vpop.f32.mrf.mxu1 }
 0xa50   : > { %v4235_v38 = vadd.f32 %v4234_v34, %v4151_v14  ;;  %v4315_v40 = vadd.f32 %v4314_v35, %v4243_v32  ;;  %v4785_v14 = vld [vmem:[%s6672_s20 + $0x1f] sm:$0x1] }
 0xa51   : > { %v6200_v43 = vpop.f32.mrf.mxu0  ;;  %v6205_v60 = vpop.f32.mrf.mxu1  ;;  %v4801_v24 = vrot.slane %v4785_v14, 5 }
 0xa52   : > { %6211 = vmatmul.mubr.msk.f32.vlgmr.msra.gmra.mxu0 %vm462_vm10, %v4315_v40  ;;  %916 = vrot.lane.b32.xlu0 %v6926_v33, %s6547_s27  ;;  %v1567_v33 = vmul.f32 %v6384_v47, %v1561_v20  ;;  %v4798_v20 = vsel %vm297_vm1, %v4797_v12, %v4782_v13  ;;  %v4878_v60 = vld [vmem:[%s7592_s1 + $0x4] sm:$0xf] }
 0xa53   : > { %6221 = vmatpush3.msk.msra.mxu0 %vm309_vm4, %v4162_v8  ;;  %6218 = vmatmul.mubr.msk.f32.vlgmr.msra.gmra.mxu1 %vm462_vm10, %v4235_v38  ;;  %v4800_v27 = vsel %vm300_vm2, %v4799_v19, %v4798_v20 }
 0xa54   : > { %6226 = vmatpush3.msk.msra.mxu1 %vm309_vm4, %v4162_v8  ;;  %6222 = vmatprep.mubr.msk.f32.mxu0 %vm6544_vm0, %v6543_v0  ;;  %v4802_v35 = vsel %vm303_vm3, %v4801_v24, %v4800_v27 }
 0xa55   : > { %6227 = vmatprep.mubr.msk.f32.mxu1 %vm6544_vm0, %v6543_v0  ;;  %6230 = vmatprep.subr.mxu0 %v6543_v0 }
 0xa56   : > { %6223 = vmatmul.mubr.msk.f32.vlgmr.msra.gmra.mxu0 %vm305_vm5, %v4464_v45  ;;  %3487 = vrot.lane.b32.xlu0 %v7272_v29, %s6547_s27 }
 0xa57   : > { %6228 = vmatmul.mubr.msk.f32.vlgmr.msra.gmra.mxu1 %vm305_vm5, %v4544_v46  ;;  %6237 = vmatprep.subr.mxu1 %v6543_v0 }
 0xa58   : > { %6231 = vmatpush3.msk.msra.mxu0 %vm6766_vm7, %v6546_v37  ;;  %6238 = vmatpush3.msk.msra.mxu1 %vm6759_vm6, %v6546_v37 }
 0xa59   : > { %6232 = vmatprep.subr.mxu0 %v6543_v0  ;;  %6239 = vmatprep.subr.mxu1 %v6543_v0 }
 0xa5a   : > { %1569 = vrot.lane.b32.xlu0 %v1567_v33, %s6548_s26  ;;  %6233 = vmatpush3.msk.msra.mxu0 %vm6775_vm8, %v6546_v37 }
 0xa5b   : > { %6240 = vmatpush3.msk.msra.mxu1 %vm6779_vm9, %v6546_v37  ;;  %6234 = vmatprep.mubr.msk.f32.mxu0 %vm6544_vm0, %v6543_v0 }
 0xa5c   : > { %6241 = vmatprep.mubr.msk.f32.mxu1 %vm6544_vm0, %v6543_v0  ;;  %6244 = vmatprep.subr.mxu0 %v6543_v0 }
 0xa5d   : > { %6249 = vmatprep.subr.mxu1 %v6543_v0 }
 0xac0   : > { %v4128_v29 = vpop.permute.xlu0 %4127 }
 0xac1   : > { %v4130_v48 = vsel %vm919_vm11, %v7317_v58, %v4128_v29 }
 0xac2   : > { %v4131_v49 = vsub.f32 0.0, %v4130_v48 }
 0xac4   : > { %v4132_v50 = vmul.f32 1.442695, %v4131_v49  ;;  %v917_v51 = vpop.permute.xlu0 %916  ;;  %v4883_v49 = vpop.permute.xlu1 %4882 }
 0xac5   : > { %v920_v52 = vsel %vm919_vm11, %v6884_v16, %v917_v51 }
 0xac6   : > { %6385 = vpow2.f32 %v4132_v50  ;;  %v921_v53 = vsub.f32 0.0, %v920_v52 }
 0xac8   : > { %v922_v54 = vmul.f32 1.442695, %v921_v53  ;;  %v3488_v55 = vpop.permute.xlu0 %3487 }
 0xac9   : > { %v3490_v56 = vsel %vm919_vm11, %v7230_v9, %v3488_v55 }
 0xaca   : > { %6387 = vpow2.f32 %v922_v54  ;;  %v3491_v57 = vsub.f32 0.0, %v3490_v56 }
 0xacc   : > { %v3492_v59 = vmul.f32 1.442695, %v3491_v57  ;;  %v1570_v6 = vpop.permute.xlu0 %1569 }
 0xace   : > { %6389 = vpow2.f32 %v3492_v59 }
 0xad3   : > { %v6386_v61 = vpop.eup %6385 }
 0xad4   : > { %v4134_v58 = vadd.f32 1.0, %v6386_v61 }
 0xad6   : > { %6391 = vrcp.f32 %v4134_v58 }
 0xad7   : > { %v6388_v62 = vpop.eup %6387 }
 0xad8   : > { %v924_v1 = vadd.f32 1.0, %v6388_v62  ;;  %v5189_v62 = vpop.permute.xlu1 %5188 }
 0xada   : > { %6393 = vrcp.f32 %v924_v1 }
 0xadb   : > { %v6390_v2 = vpop.eup %6389 }
 0xadc   : > { %v3494_v16 = vadd.f32 1.0, %v6390_v2 }
 0xade   : > { %6395 = vrcp.f32 %v3494_v16 }
 0xae3   : > { %v6392_v3 = vpop.eup %6391 }
 0xae4   : > { %v4136_v4 = vmul.f32 %v6392_v3, %v4130_v48 }
 0xae6   : > { %4138 = vrot.lane.b32.xlu0 %v4136_v4, %s6548_s26 }
 0xae7   : > { %v6394_v9 = vpop.eup %6393 }
 0xae8   : > { %v926_v5 = vmul.f32 %v6394_v9, %v920_v52 }
 0xaea   : > { %928 = vst.msk [vmem:[%s7419_s10] sm:$0xf] %vm927_vm12, %v926_v5 }
 0xaeb   : > { %v6396_v7 = vpop.eup %6395  ;;  %1573 = vst.msk [vmem:[%s7419_s10] sm:$0xf] %vm1572_vm13, %v1570_v6 }
 0xaec   : > { %v3496_v8 = vmul.f32 %v6396_v7, %v3490_v56  ;;  %v5104_v56 = vld [vmem:[%s7592_s1 + $0x8] sm:$0xf] }
 0xaee   : > { %3497 = vst.msk [vmem:[%s7419_s10 + $0x8] sm:$0xf] %vm927_vm12, %v3496_v8 }
 0xb12   : > { %v4387_v21 = vpop.f32.mrf.mxu0 }
 0xb13   : > { %v4460_v22 = vpop.f32.mrf.mxu1 }
 0xb14   : > { %v7432_v25 = vadd.f32 %v4460_v22, %v4387_v21  ;;  %v6212_v26 = vpop.f32.mrf.mxu0 }
 0xb15   : > { %v6219_v28 = vpop.f32.mrf.mxu1 }
 0xb16   : > { %v4540_v30 = vpop.f32.mrf.mxu0 }
 0xb17   : > { %v4541_v32 = vadd.f32 %v4540_v30, %v7359_v15  ;;  %v4620_v34 = vpop.f32.mrf.mxu1  ;;  %v4786_v15 = vld [vmem:[%s7592_s1] sm:$0xf] }
 0xb18   : > { %v4621_v38 = vadd.f32 %v4620_v34, %v4549_v31  ;;  %v6224_v40 = vpop.f32.mrf.mxu0 }
 0xb19   : > { %v6229_v43 = vpop.f32.mrf.mxu1  ;;  %6242 = vmatmul.mubr.msk.f32.vlgmr.msra.gmra.mxu1 %vm462_vm10, %v4541_v32 }
 0xb1a   : > { %6235 = vmatmul.mubr.msk.f32.vlgmr.msra.gmra.mxu0 %vm462_vm10, %v4621_v38  ;;  %6250 = vmatpush3.msk.msra.mxu1 %vm309_vm4, %v4802_v35 }
 0xb1b   : > { %6245 = vmatpush3.msk.msra.mxu0 %vm309_vm4, %v4802_v35  ;;  %6246 = vmatprep.mubr.msk.f32.mxu0 %vm6544_vm0, %v6543_v0 }
 0xb1c   : > { %6251 = vmatprep.mubr.msk.f32.mxu1 %vm6544_vm0, %v6543_v0  ;;  %6254 = vmatprep.subr.mxu0 %v6543_v0 }
 0xb1d   : > { %6252 = vmatmul.mubr.msk.f32.vlgmr.msra.gmra.mxu1 %vm305_vm5, %v4878_v60  ;;  %6261 = vmatprep.subr.mxu1 %v6543_v0 }
 0xb1e   : > { %6247 = vmatmul.mubr.msk.f32.vlgmr.msra.gmra.mxu0 %vm305_vm5, %v4786_v15  ;;  %6262 = vmatpush3.msk.msra.mxu1 %vm6759_vm6, %v6546_v37 }
 0xb1f   : > { %6255 = vmatpush3.msk.msra.mxu0 %vm6766_vm7, %v6546_v37  ;;  %6263 = vmatprep.subr.mxu1 %v6543_v0 }
 0xb20   : > { %6256 = vmatprep.subr.mxu0 %v6543_v0  ;;  %6264 = vmatpush3.msk.msra.mxu1 %vm6779_vm9, %v6546_v37 }
 0xb21   : > { %6257 = vmatpush3.msk.msra.mxu0 %vm6775_vm8, %v6546_v37  ;;  %6258 = vmatprep.mubr.msk.f32.mxu0 %vm6544_vm0, %v6543_v0 }
 0xb22   : > { %6265 = vmatprep.mubr.msk.f32.mxu1 %vm6544_vm0, %v6543_v0  ;;  %6268 = vmatprep.subr.mxu0 %v6543_v0 }
 0xb23   : > { %6273 = vmatprep.subr.mxu1 %v6543_v0 }
 0xb58   : > { %v4139_v45 = vpop.permute.xlu0 %4138 }
 0xb59   : > { %4141 = vst.msk [vmem:[%s7419_s10 + $0x8] sm:$0xf] %vm1572_vm13, %v4139_v45 }
 0xbd9   : > { %v4766_v46 = vpop.f32.mrf.mxu1 }
 0xbda   : > { %v4693_v47 = vpop.f32.mrf.mxu0 }
 0xbdb   : > { %v4767_v33 = vadd.f32 %v4766_v46, %v4693_v47  ;;  %v6243_v29 = vpop.f32.mrf.mxu1 }
 0xbdc   : > { %v6236_v48 = vpop.f32.mrf.mxu0 }
 0xbdd   : > { %v4954_v50 = vpop.f32.mrf.mxu1 }
 0xbde   : > { %v4874_v51 = vpop.f32.mrf.mxu0  ;;  %v4955_v52 = vadd.f32 %v4954_v50, %v4883_v49 }
 0xbdf   : > { %v4875_v53 = vadd.f32 %v4874_v51, %v7361_v17  ;;  %v6253_v54 = vpop.f32.mrf.mxu1  ;;  %v5184_v17 = vld [vmem:[%s7592_s1 + $0xc] sm:$0xf] }
 0xbe0   : > { %v6248_v55 = vpop.f32.mrf.mxu0  ;;  %6259 = vmatmul.mubr.msk.f32.vlgmr.msra.gmra.mxu0 %vm462_vm10, %v4955_v52 }
 0xbe1   : > { %6266 = vmatmul.mubr.msk.f32.vlgmr.msra.gmra.mxu1 %vm462_vm10, %v4875_v53  ;;  %6269 = vmatpush3.msk.msra.mxu0 %vm309_vm4, %v4802_v35 }
 0xbe2   : > { %6274 = vmatpush3.msk.msra.mxu1 %vm309_vm4, %v4802_v35  ;;  %6270 = vmatprep.mubr.msk.f32.mxu0 %vm6544_vm0, %v6543_v0 }
 0xbe3   : > { %6275 = vmatprep.mubr.msk.f32.mxu1 %vm6544_vm0, %v6543_v0  ;;  %6278 = vmatprep.subr.mxu0 %v6543_v0 }
 0xbe4   : > { %6271 = vmatmul.mubr.msk.f32.vlgmr.msra.gmra.mxu0 %vm305_vm5, %v5104_v56  ;;  %6285 = vmatprep.subr.mxu1 %v6543_v0 }
 0xbe5   : > { %6276 = vmatmul.mubr.msk.f32.vlgmr.msra.gmra.mxu1 %vm305_vm5, %v5184_v17  ;;  %6279 = vmatpush3.msk.msra.mxu0 %vm6766_vm7, %v6546_v37 }
 0xbe6   : > { %6286 = vmatpush3.msk.msra.mxu1 %vm6759_vm6, %v6546_v37  ;;  %6280 = vmatprep.subr.mxu0 %v6543_v0 }
 0xbe7   : > { %6287 = vmatprep.subr.mxu1 %v6543_v0  ;;  %6281 = vmatpush3.msk.msra.mxu0 %vm6775_vm8, %v6546_v37 }
 0xbe8   : > { %6288 = vmatpush3.msk.msra.mxu1 %vm6779_vm9, %v6546_v37  ;;  %6282 = vmatprep.mubr.msk.f32.mxu0 %vm6544_vm0, %v6543_v0  ;;  %v2844_v37 = vpop.permute.xlu1 %2843 }
 0xbe9   : > { %6289 = vmatprep.mubr.msk.f32.mxu1 %vm6544_vm0, %v6543_v0  ;;  %v2846_v0 = vsel %vm919_vm11, %v7144_v23, %v2844_v37 }
 0xbea   : > { %v2847_v3 = vsub.f32 0.0, %v2846_v0 }
 0xbec   : > { %v2848_v4 = vmul.f32 1.442695, %v2847_v3 }
 0xbee   : > { %6397 = vpow2.f32 %v2848_v4 }
 0xbfb   : > { %v6398_v9 = vpop.eup %6397 }
 0xbfc   : > { %v2850_v5 = vadd.f32 1.0, %v6398_v9 }
 0xbfe   : > { %6399 = vrcp.f32 %v2850_v5 }
 0xc0b   : > { %v6400_v11 = vpop.eup %6399 }
 0xc0c   : > { %v2852_v23 = vmul.f32 %v6400_v11, %v2846_v0 }
 0xca0   : > { %v5027_v36 = vpop.f32.mrf.mxu0 }
 0xca1   : > { %v5100_v39 = vpop.f32.mrf.mxu1 }
 0xca2   : > { %v5101_v57 = vadd.f32 %v5100_v39, %v5027_v36  ;;  %v6260_v59 = vpop.f32.mrf.mxu0 }
 0xca3   : > { %v6267_v61 = vpop.f32.mrf.mxu1 }
 0xca4   : > { %v5180_v58 = vpop.f32.mrf.mxu0 }
 0xca5   : > { %v5181_v41 = vadd.f32 %v5180_v58, %v7363_v18  ;;  %v5260_v1 = vpop.f32.mrf.mxu1 }
 0xca6   : > { %v5261_v2 = vadd.f32 %v5260_v1, %v5189_v62  ;;  %v6272_v16 = vpop.f32.mrf.mxu0 }
 0xca7   : > { %v6277_v42 = vpop.f32.mrf.mxu1  ;;  %6290 = vmatmul.mubr.msk.f32.vlgmr.msra.gmra.mxu1 %vm462_vm10, %v5181_v41 }
 0xca8   : > { %6283 = vmatmul.mubr.msk.f32.vlgmr.msra.gmra.mxu0 %vm462_vm10, %v5261_v2 }
 0xd67   : > { %v5406_v6 = vpop.f32.mrf.mxu1 }
 0xd68   : > { %v5333_v18 = vpop.f32.mrf.mxu0 }
 0xd69   : > { %v5407_v7 = vadd.f32 %v5406_v6, %v5333_v18  ;;  %v6291_v8 = vpop.f32.mrf.mxu1 }
 0xd6a   : > { %v6284_v10 = vpop.f32.mrf.mxu0 }
 0xd6b   : > { %5411 = vrot.lane.b32.xlu1 %v5407_v7, %s6547_s27 }
 0xd6f   : > { %2203 = vrot.lane.b32.xlu1 %v7099_v63, %s6547_s27 }
 0xd73   : > { %4771 = vrot.lane.b32.xlu1 %v4767_v33, %s6547_s27  ;;  %s5743_s27 = sshll.u32 %s6521_s15, 2  ;;  %s6549_s15 = smov [#allocation5]  }
 0xd74   : > { %s5441_s22 = sadd.s32 %s5744_s8, %s5743_s27  ;;  %s6445_s16 = sshll.u32 %s6549_s15, 4  ;;  %s6446_s16 = int_to_ptr.vmem [resolvable:$false] %s6445_s16 }
 0xd75   : > { %s5745_s23 = sshll.u32 %s5441_s22, 6  ;;  %s6447_s29 = scalar_lea.vmem %s6446_s16, 512 }
 0xd76   : > { %s7542_s11 = scalar_lea.hbm %s7594_s3, %s5745_s23  ;;  %p6448_p4 = scmp.lt.s32.totalorder %s5446_s9, %s6446_s16 }
 0xd77   : > { %2854 = vrot.lane.b32.xlu1 %v2852_v23, %s6548_s26  ;;  %p6449_p5 = scmp.lt.s32.totalorder %s6447_s29, %s6441_s25 }
 0xd79   : > { %p6450_p6 = por %p6449_p5, %p6448_p4 }
 0xd7b   : > { %p6451_p7 = pnand %p6450_p6, %p6444_p2 }
 0xddd   : > { %v5412_v12 = vpop.permute.xlu1 %5411 }
 0xdde   : > { %v5414_v13 = vsel %vm919_vm11, %v5101_v57, %v5412_v12 }
 0xddf   : > { %v5415_v14 = vsub.f32 0.0, %v5414_v13 }
 0xde1   : > { %v5416_v19 = vmul.f32 1.442695, %v5415_v14  ;;  %v2204_v20 = vpop.permute.xlu1 %2203 }
 0xde2   : > { %v2206_v21 = vsel %vm919_vm11, %v7057_v44, %v2204_v20 }
 0xde3   : > { %6401 = vpow2.f32 %v5416_v19  ;;  %v2207_v22 = vsub.f32 0.0, %v2206_v21 }
 0xde5   : > { %v2208_v24 = vmul.f32 1.442695, %v2207_v22  ;;  %v4772_v26 = vpop.permute.xlu1 %4771 }
 0xde6   : > { %v4774_v63 = vsel %vm919_vm11, %v7432_v25, %v4772_v26 }
 0xde7   : > { %6403 = vpow2.f32 %v2208_v24  ;;  %v4775_v27 = vsub.f32 0.0, %v4774_v63 }
 0xde9   : > { %v4776_v28 = vmul.f32 1.442695, %v4775_v27  ;;  %v2855_v60 = vpop.permute.xlu1 %2854 }
 0xdeb   : > { %6405 = vpow2.f32 %v4776_v28 }
 0xdf0   : > { %v6402_v30 = vpop.eup %6401 }
 0xdf1   : > { %v5418_v31 = vadd.f32 1.0, %v6402_v30 }
 0xdf3   : > { %6407 = vrcp.f32 %v5418_v31 }
 0xdf4   : > { %v6404_v32 = vpop.eup %6403 }
 0xdf5   : > { %v2210_v34 = vadd.f32 1.0, %v6404_v32 }
 0xdf7   : > { %6409 = vrcp.f32 %v2210_v34 }
 0xdf8   : > { %v6406_v44 = vpop.eup %6405 }
 0xdf9   : > { %v4778_v35 = vadd.f32 1.0, %v6406_v44 }
 0xdfb   : > { %6411 = vrcp.f32 %v4778_v35 }
 0xe00   : > { %v6408_v25 = vpop.eup %6407 }
 0xe01   : > { %v5420_v38 = vmul.f32 %v6408_v25, %v5414_v13 }
 0xe03   : > { %5422 = vrot.lane.b32.xlu1 %v5420_v38, %s6548_s26 }
 0xe04   : > { %v6410_v40 = vpop.eup %6409 }
 0xe05   : > { %v2212_v43 = vmul.f32 %v6410_v40, %v2206_v21 }
 0xe07   : > { %2213 = vst.msk [vmem:[%s7419_s10 + $0x4] sm:$0xf] %vm927_vm12, %v2212_v43 }
 0xe08   : > { %v6412_v15 = vpop.eup %6411  ;;  %2857 = vst.msk [vmem:[%s7419_s10 + $0x4] sm:$0xf] %vm1572_vm13, %v2855_v60 }
 0xe09   : > { %v4780_v45 = vmul.f32 %v6412_v15, %v4774_v63 }
 0xe0b   : > { %4781 = vst.msk [vmem:[%s7419_s10 + $0xc] sm:$0xf] %vm927_vm12, %v4780_v45 }
 0xe75   : > { %v5423_v46 = vpop.permute.xlu1 %5422 }
 0xe76   : > { %5425 = vst.msk [vmem:[%s7419_s10 + $0xc] sm:$0xf] %vm1572_vm13, %v5423_v46 }
 0xe77   : > { %6454 = shalt.err (!%p6451_p7)
}
 0xe78   : > { %s6455_s10 = scalar_lea.hbm %s7542_s11, 256  ;;  %s6459_s30 = scalar_lea.hbm %s7594_s3, 1024 }
 0xe79   : > { %p6456_p10 = scmp.ne.s32.totalorder %s7542_s11, %s6455_s10  ;;  %p6460_p13 = scmp.lt.s32.totalorder %s7542_s11, %s7594_s3 }
 0xe7a   : > { %p6461_p1 = scmp.lt.s32.totalorder %s6459_s30, %s6455_s10 }
 0xe7b   : > { %p6457_p11 = pnand %p6456_p10, %p6635_p9 }
 0xe7c   : > { %p6462_p8 = por %p6461_p1, %p6460_p13 }
 0xe7d   : > { %p6458_p3 = pneg %p6457_p11 }
 0xe7f   : > { %p6463_p0 = pnand %p6462_p8, %p6458_p3 }
 0xe81   : > { %6466 = shalt.err (!%p6463_p0)
}
 0xe82   : > { %6294 = dma.vmem_to_hbm [thread:$0]  (%p6635_p9), %s5446_s9, 256, %s7542_s11, %s5427_s21  }
 0xe83 PF: > { %p6305_p2 = scmp.ge.s32.totalorder %s6537_s19, 2  ;;  %s5457_s8 = sand.u32 1, %s6509_s12  }
 0xe84   : > { %s5458_s22 = scalar_lea.sflag [#allocation4], %s5457_s8 }
 0xe85   : > { %p6301_p4 = pnand %p6305_p2, %p6641_p12 }
 0xe87   : > { %p6302_p5 = pneg %p6301_p4 }
 0xe89   : > { %6504 = dma.done.wait (%p6302_p5), %s5458_s22, 256  }
 0xe8a   : > { %6506 = vsyncadd (%p6302_p5), %s5458_s22, 4294967040  ;;  %s19_s19 = sadd.s32 1, %s6537_s19   ;;  %s7612_s28 = sld [smem:[#allocation8_spill]] }
 0xe8b   : > { %p16_p6 = scmp.ge.s32.totalorder %s19_s19, 6   ;;  %s7613_s23 = sld [smem:[#allocation9_spill]] }
 0xe8c   : > { %s7614_s12 = smov %s6513_s13  ;;  %s7615_s13 = smov %s6517_s14 }
 0xe8d   : > { %s7616_s14 = smov %s6648_s6  ;;  %s7617_s15 = smov %s6529_s17 }
 0xe8e   : > { %s7618_s16 = smov %s6533_s18  ;;  %18 = sbr.rel (!%p16_p6) target bundleno = 7 (0x7), region = 83 }
 0xe90   : > { %s7619_s17 = smov %s7612_s28 }
 0xe91   : > { %s7620_s18 = smov %s7613_s23 }
 0xe93   :  { %5463 = vsyncpa [#allocation3], 1 }
 0xe94   :  { %5465 = vsyncpa [#allocation3 + $0x1], 1 }
 0xe95   :  { %5466 = vsyncpa [#allocation4], 1 }
 0xe96   :  { %5468 = vsyncpa [#allocation4 + $0x1], 1 }

</bundles_post_ra>
